<compile_context>
chip_gen: v7x
topology: tpu7x:2x2x1
jax: 0.10.0
libtpu: 0.0.40
codegen_flags: <defaults>
</compile_context>

<pallas_src>
import functools

import jax
import jax.numpy as jnp
import numpy as np
from jax import lax
from jax.experimental import pallas as pl
from jax.experimental.pallas import tpu as pltpu


def _round_up(a, b):
    return (a + b - 1) // b * b


def _cdiv(a, b):
    return -(-a // b)


def _conv_tile(w_ref, main_ref, halo_ref, slab_ref, patch_ref, *, tile_m, cin_p,
               tap_offsets):
    """Per-tile conv: assemble halo slab, fold all k^3 taps into ONE MXU matmul.

    Returns the (Cout_p, tile_m) f32 conv result for this tile (transposed layout:
    channels on sublanes, positions on lanes).
    """
    # Contiguous slab = [this tile's TM columns | halo_p columns of the next tile].
    slab_ref[:, :tile_m] = main_ref[...]
    slab_ref[:, tile_m:] = halo_ref[...]
    # Folded patch (T*Cin_p, tile_m): tap t occupies sublane-aligned rows
    # [t*Cin_p, (t+1)*Cin_p) and is a lane-shifted view of the slab.  This replaces
    # 27 skinny K=Cin matmuls + 26 output RMWs with a single K=T*Cin_p contraction.
    for t, off in enumerate(tap_offsets):
        patch_ref[t * cin_p:(t + 1) * cin_p, :] = slab_ref[:, off:off + tile_m]
    # (Cout_p, T*Cin_p) @ (T*Cin_p, tile_m): bf16 operands, f32 accumulation; the big
    # tile_m dim sits on the MXU's fully-fed N axis.
    return jnp.dot(w_ref[...], patch_ref[...], preferred_element_type=jnp.float32)


def _stats_kernel(w_ref, mask_ref, main_ref, halo_ref, psum_ref, psq_ref,
                  slab_ref, patch_ref, *, tile_m, cin_p, tap_offsets):
    """Pass 1 (stats only, no conv writeback): partial BN sums over valid positions."""
    conv = _conv_tile(w_ref, main_ref, halo_ref, slab_ref, patch_ref,
                      tile_m=tile_m, cin_p=cin_p, tap_offsets=tap_offsets)
    cm = conv * mask_ref[...]                               # mask is (1, tile_m)
    psum_ref[0] = jnp.sum(cm, axis=1, keepdims=True)        # (Cout_p, 1)
    psq_ref[0] = jnp.sum(cm * conv, axis=1, keepdims=True)  # (Cout_p, 1)


def _fused_kernel(w_ref, scale_ref, shift_ref, main_ref, halo_ref, out_ref,
                  slab_ref, patch_ref, *, tile_m, cin_p, tap_offsets):
    """Pass 2: recompute conv (cheaper than an f32 HBM round-trip) + BN + ReLU."""
    conv = _conv_tile(w_ref, main_ref, halo_ref, slab_ref, patch_ref,
                      tile_m=tile_m, cin_p=cin_p, tap_offsets=tap_offsets)
    out_ref[...] = jnp.maximum(conv * scale_ref[...] + shift_ref[...], 0.0)


def conv3d_bn_relu(x, weight, gamma, beta, *, kernel_size=3, stride=1, eps=1e-5):
    """Equivalent of Conv3d(in, out, k=3, stride=1, relu=True, bn=True).forward(x)."""
    assert stride == 1  # TODO(synk): stride=2 path of the module is not implemented.
    N, Cin, D, H, W = x.shape
    Cout = weight.shape[0]
    k = kernel_size
    Do, Ho, Wo = D - k + 1, H - k + 1, W - k + 1     # padding=0 (nn.Conv3d default)
    assert Do > 0 and Ho > 0 and Wo > 0
    HW = H * W
    G = N * D * H * W                                # flattened (overcomputed) grid
    T = k * k * k
    count = float(N * Do * Ho * Wo)                  # valid BN element count (static)

    Cin_p = _round_up(Cin, 8)                        # sublane-friendly channel padding
    Cout_p = _round_up(Cout, 8)

    # Max tap flat offset -> halo width.  halo_p is also the halo BlockSpec size, so it
    # is rounded to lanes and TM must be a multiple of it (halo block = exact block idx).
    halo = (k - 1) * (HW + W + 1)
    halo_p = _round_up(halo, 128)
    # TODO(synk): when H*W is huge, halo_p dominates TM; tile along H inside the slab.

    # Position-tile size: multiple of halo_p (and hence of 128, lane-dense).  Target
    # >= 2 tiles so v7x's two TensorCores both get work under "parallel" semantics.
    tm_target = min(2048, max(128, _round_up(_cdiv(G, 2), 128)))
    TM = _round_up(tm_target, halo_p)
    # Keep the folded patch comfortably inside VMEM on all generations
    # (v7x: 64 MiB physical / 32 MiB scoped default).
    while TM > halo_p and T * Cin_p * TM * 2 > 8 * 1024 * 1024:
        TM -= halo_p
    num_tiles = _cdiv(G, TM)
    G_tiles = num_tiles * TM
    G_pad = G_tiles + halo_p

    # ---- layout prep (plain JAX, no k^3 duplication in HBM) ----
    # Channels-first flattened: lane dim is the big position axis -> lane-dense slabs.
    x_cf = jnp.transpose(x, (1, 0, 2, 3, 4)).reshape(Cin, G)
    x_cf = jnp.pad(x_cf, ((0, Cin_p - Cin), (0, G_pad - G))).astype(jnp.bfloat16)

    # Folded weight matrix: (Cout_p, T*Cin_p), row-padded channels are zeros.
    w_t = jnp.transpose(weight, (0, 2, 3, 4, 1))     # (Cout, kd, kh, kw, Cin)
    w_t = jnp.pad(w_t, ((0, Cout_p - Cout), (0, 0), (0, 0), (0, 0), (0, Cin_p - Cin)))
    w_mat = w_t.reshape(Cout_p, T * Cin_p).astype(jnp.bfloat16)

    # Tap t = (kd*k + kh)*k + kw  <->  flat column offset kd*H*W + kh*W + kw.
    tap_offsets = tuple(kd * HW + kh * W + kw
                        for kd in range(k) for kh in range(k) for kw in range(k))

    # Validity mask over the flattened position axis (lane-dense (1, G_tiles)).
    # TODO(synk): generate in-kernel from program_id + iota to drop this O(G) input.
    g_idx = np.arange(G_tiles)
    w_i = g_idx % W
    h_i = (g_idx // W) % H
    d_i = (g_idx // HW) % D
    valid = (g_idx < G) & (d_i < Do) & (h_i < Ho) & (w_i < Wo)
    mask = jnp.asarray(valid.astype(np.float32)[None, :])        # (1, G_tiles)

    kern_kwargs = dict(tile_m=TM, cin_p=Cin_p, tap_offsets=tap_offsets)
    scratch = [pltpu.VMEM((Cin_p, TM + halo_p), jnp.bfloat16),   # contiguous halo slab
               pltpu.VMEM((T * Cin_p, TM), jnp.bfloat16)]        # folded patch
    # Two auto-pipelined views of the same HBM array: this tile's TM columns plus the
    # halo_p columns right after them.  Pallas double-buffers both (prefetch of the
    # next tile's slab overlaps this tile's compute), parallel-safe on v7x megacore.
    x_main_spec = pl.BlockSpec((Cin_p, TM), lambda i: (0, i))
    x_halo_spec = pl.BlockSpec((Cin_p, halo_p),
                               lambda i: (0, (i + 1) * (TM // halo_p)))
    w_spec = pl.BlockSpec((Cout_p, T * Cin_p), lambda i: (0, 0))

    # ---- pass 1: stats only (no conv HBM round-trip) ----
    psum, psq = pl.pallas_call(
        functools.partial(_stats_kernel, **kern_kwargs),
        out_shape=(jax.ShapeDtypeStruct((num_tiles, Cout_p, 1), jnp.float32),
                   jax.ShapeDtypeStruct((num_tiles, Cout_p, 1), jnp.float32)),
        grid_spec=pltpu.PrefetchScalarGridSpec(
            num_scalar_prefetch=0,
            grid=(num_tiles,),
            in_specs=[w_spec,
                      pl.BlockSpec((1, TM), lambda i: (0, i)),     # validity mask
                      x_main_spec, x_halo_spec],
            out_specs=(pl.BlockSpec((1, Cout_p, 1), lambda i: (i, 0, 0)),
                       pl.BlockSpec((1, Cout_p, 1), lambda i: (i, 0, 0))),
            scratch_shapes=scratch),
        compiler_params=pltpu.CompilerParams(
            dimension_semantics=("parallel",)),       # v7x: split tiles across 2 TCs
    )(w_mat, mask, x_cf, x_cf)

    # ---- global BN statistics from the tiny per-tile partials (plain JAX) ----
    total_sum = jnp.sum(psum, axis=0)[:, 0]           # (Cout_p,)
    total_sq = jnp.sum(psq, axis=0)[:, 0]
    mean = total_sum / count
    # Biased variance, as used by PyTorch BN for normalization.
    # TODO(synk): Welford / shifted-mean combine of the partials if |mean| >> std.
    var = total_sq / count - mean * mean
    inv_std = lax.rsqrt(var + eps)
    gamma_p = jnp.pad(gamma.astype(jnp.float32), (0, Cout_p - Cout))
    beta_p = jnp.pad(beta.astype(jnp.float32), (0, Cout_p - Cout))
    scale = (gamma_p * inv_std).reshape(Cout_p, 1)
    shift = (beta_p - mean * gamma_p * inv_std).reshape(Cout_p, 1)

    # ---- pass 2: recompute conv fused with normalize + ReLU, lane-dense writeback ----
    y_full = pl.pallas_call(
        functools.partial(_fused_kernel, **kern_kwargs),
        out_shape=jax.ShapeDtypeStruct((Cout_p, G_tiles), jnp.float32),
        grid_spec=pltpu.PrefetchScalarGridSpec(
            num_scalar_prefetch=0,
            grid=(num_tiles,),
            in_specs=[w_spec,
                      pl.BlockSpec((Cout_p, 1), lambda i: (0, 0)),   # scale
                      pl.BlockSpec((Cout_p, 1), lambda i: (0, 0)),   # shift
                      x_main_spec, x_halo_spec],
            out_specs=pl.BlockSpec((Cout_p, TM), lambda i: (0, i)),
            scratch_shapes=scratch),
        compiler_params=pltpu.CompilerParams(
            dimension_semantics=("parallel",)),
    )(w_mat, scale, shift, x_cf, x_cf)

    # ---- back to PyTorch NCDHW output layout (drop padded channels / invalid cols) ----
    y = y_full[:Cout, :G].reshape(Cout, N, D, H, W)[:, :, :Do, :Ho, :Wo]
    return jnp.transpose(y, (1, 0, 2, 3, 4))          # (N, Cout, Do, Ho, Wo)


def _reference(x, weight, gamma, beta, eps=1e-5):
    conv = lax.conv_general_dilated(
        x, weight, window_strides=(1, 1, 1), padding="VALID",
        dimension_numbers=("NCDHW", "OIDHW", "NCDHW"),
        precision=lax.Precision.HIGHEST)
    mean = conv.mean(axis=(0, 2, 3, 4), keepdims=True)
    var = conv.var(axis=(0, 2, 3, 4), keepdims=True)   # biased variance
    g = gamma.reshape(1, -1, 1, 1, 1)
    b = beta.reshape(1, -1, 1, 1, 1)
    return jnp.maximum((conv - mean) * lax.rsqrt(var + eps) * g + b, 0.0)


if __name__ == "__main__":
    N, Cin, Cout, D, H, W, K = 2, 4, 8, 8, 8, 8, 3

    key = jax.random.PRNGKey(0)
    kx, kw = jax.random.split(key)
    x = jax.random.normal(kx, (N, Cin, D, H, W), dtype=jnp.float32)

    # Deterministic xavier-uniform conv weight (matches init_weights('xavier')).
    fan_in = Cin * K * K * K
    fan_out = Cout * K * K * K
    bound = float(np.sqrt(6.0 / (fan_in + fan_out)))
    weight = jax.random.uniform(kw, (Cout, Cin, K, K, K), dtype=jnp.float32,
                                minval=-bound, maxval=bound)
    # BatchNorm3d affine params (ones / zeros).  No conv bias since bn=True.
    gamma = jnp.ones((Cout,), dtype=jnp.float32)
    beta = jnp.zeros((Cout,), dtype=jnp.float32)

    out = conv3d_bn_relu(x, weight, gamma, beta, kernel_size=K, stride=1)
    out = jax.block_until_ready(out)

    # Check vs the full-f32 reference (kernel conv operands are bf16 -> looser tol).
    ref = jax.block_until_ready(_reference(x, weight, gamma, beta))
    np.testing.assert_allclose(np.asarray(out), np.asarray(ref), rtol=2e-2, atol=2e-2)

    # Tight check vs a reference fed the same bf16-rounded operands (f32 accumulation
    # on both sides -> only summation-order differences remain).
    xb = x.astype(jnp.bfloat16).astype(jnp.float32)
    wb = weight.astype(jnp.bfloat16).astype(jnp.float32)
    ref_b = jax.block_until_ready(_reference(xb, wb, gamma, beta))
    np.testing.assert_allclose(np.asarray(out), np.asarray(ref_b), rtol=1e-3, atol=1e-3)

    print("KERNEL_OK")
</pallas_src>

<mosaic_0001>
module attributes {stable_mosaic.version = 11 : i64} {
  func.func @_stats_kernel(%arg0: i32, %arg1: memref<8x216xbf16, #tpu.memory_space<vmem>>, %arg2: memref<1x512xf32, #tpu.memory_space<vmem>>, %arg3: memref<8x512xbf16, #tpu.memory_space<vmem>>, %arg4: memref<8x256xbf16, #tpu.memory_space<vmem>>, %arg5: memref<1x8x1xf32, #tpu.memory_space<vmem>>, %arg6: memref<1x8x1xf32, #tpu.memory_space<vmem>>, %arg7: memref<8x768xbf16, #tpu.memory_space<vmem>>, %arg8: memref<216x512xbf16, #tpu.memory_space<vmem>>) attributes {dimension_semantics = [#tpu.dimension_semantics<parallel>], iteration_bounds = array<i64: 2>, scalar_prefetch = 0 : i64, scratch_operands = 2 : i64, tpu.core_type = #tpu.core_type<tc>, window_params = [{pipeline_mode = #tpu.pipeline_mode<synchronous>, transform_indices = @transform_0, window_bounds = array<i64: 8, 216>}, {transform_indices = @transform_1, window_bounds = array<i64: 1, 512>}, {transform_indices = @transform_2, window_bounds = array<i64: 8, 512>}, {transform_indices = @transform_3, window_bounds = array<i64: 8, 256>}, {transform_indices = @transform_4, window_bounds = array<i64: 1, 8, 1>}, {transform_indices = @transform_5, window_bounds = array<i64: 1, 8, 1>}]} {
    %c0 = arith.constant 0 : index
    %c0_0 = arith.constant 0 : index
    %0 = vector.load %arg3[%c0, %c0_0] : memref<8x512xbf16, #tpu.memory_space<vmem>>, vector<8x512xbf16>
    %c0_1 = arith.constant 0 : index
    %c0_2 = arith.constant 0 : index
    %1 = vector.load %arg7[%c0_1, %c0_2] : memref<8x768xbf16, #tpu.memory_space<vmem>>, vector<8x512xbf16>
    tpu.vector_store %arg7[%c0_1, %c0_2], %0 {strides = array<i32>} : memref<8x768xbf16, #tpu.memory_space<vmem>>, vector<8x512xbf16>,
    %c0_3 = arith.constant 0 : index
    %c0_4 = arith.constant 0 : index
    %2 = vector.load %arg4[%c0_3, %c0_4] : memref<8x256xbf16, #tpu.memory_space<vmem>>, vector<8x256xbf16>
    %c0_5 = arith.constant 0 : index
    %c512 = arith.constant 512 : index
    %3 = vector.load %arg7[%c0_5, %c512] : memref<8x768xbf16, #tpu.memory_space<vmem>>, vector<8x256xbf16>
    tpu.vector_store %arg7[%c0_5, %c512], %2 {strides = array<i32>} : memref<8x768xbf16, #tpu.memory_space<vmem>>, vector<8x256xbf16>,
    %c0_6 = arith.constant 0 : index
    %c0_7 = arith.constant 0 : index
    %4 = vector.load %arg7[%c0_6, %c0_7] : memref<8x768xbf16, #tpu.memory_space<vmem>>, vector<8x512xbf16>
    %c0_8 = arith.constant 0 : index
    %c0_9 = arith.constant 0 : index
    %5 = vector.load %arg8[%c0_8, %c0_9] : memref<216x512xbf16, #tpu.memory_space<vmem>>, vector<8x512xbf16>
    tpu.vector_store %arg8[%c0_8, %c0_9], %4 {strides = array<i32>} : memref<216x512xbf16, #tpu.memory_space<vmem>>, vector<8x512xbf16>,
    %c0_10 = arith.constant 0 : index
    %c1 = arith.constant 1 : index
    %6 = vector.load %arg7[%c0_10, %c1] : memref<8x768xbf16, #tpu.memory_space<vmem>>, vector<8x512xbf16>
    %c8 = arith.constant 8 : index
    %c0_11 = arith.constant 0 : index
    %7 = vector.load %arg8[%c8, %c0_11] : memref<216x512xbf16, #tpu.memory_space<vmem>>, vector<8x512xbf16>
    tpu.vector_store %arg8[%c8, %c0_11], %6 {strides = array<i32>} : memref<216x512xbf16, #tpu.memory_space<vmem>>, vector<8x512xbf16>,
    %c0_12 = arith.constant 0 : index
    %c2 = arith.constant 2 : index
    %8 = vector.load %arg7[%c0_12, %c2] : memref<8x768xbf16, #tpu.memory_space<vmem>>, vector<8x512xbf16>
    %c16 = arith.constant 16 : index
    %c0_13 = arith.constant 0 : index
    %9 = vector.load %arg8[%c16, %c0_13] : memref<216x512xbf16, #tpu.memory_space<vmem>>, vector<8x512xbf16>
    tpu.vector_store %arg8[%c16, %c0_13], %8 {strides = array<i32>} : memref<216x512xbf16, #tpu.memory_space<vmem>>, vector<8x512xbf16>,
    %c0_14 = arith.constant 0 : index
    %c8_15 = arith.constant 8 : index
    %10 = vector.load %arg7[%c0_14, %c8_15] : memref<8x768xbf16, #tpu.memory_space<vmem>>, vector<8x512xbf16>
    %c24 = arith.constant 24 : index
    %c0_16 = arith.constant 0 : index
    %11 = vector.load %arg8[%c24, %c0_16] : memref<216x512xbf16, #tpu.memory_space<vmem>>, vector<8x512xbf16>
    tpu.vector_store %arg8[%c24, %c0_16], %10 {strides = array<i32>} : memref<216x512xbf16, #tpu.memory_space<vmem>>, vector<8x512xbf16>,
    %c0_17 = arith.constant 0 : index
    %c9 = arith.constant 9 : index
    %12 = vector.load %arg7[%c0_17, %c9] : memref<8x768xbf16, #tpu.memory_space<vmem>>, vector<8x512xbf16>
    %c32 = arith.constant 32 : index
    %c0_18 = arith.constant 0 : index
    %13 = vector.load %arg8[%c32, %c0_18] : memref<216x512xbf16, #tpu.memory_space<vmem>>, vector<8x512xbf16>
    tpu.vector_store %arg8[%c32, %c0_18], %12 {strides = array<i32>} : memref<216x512xbf16, #tpu.memory_space<vmem>>, vector<8x512xbf16>,
    %c0_19 = arith.constant 0 : index
    %c10 = arith.constant 10 : index
    %14 = vector.load %arg7[%c0_19, %c10] : memref<8x768xbf16, #tpu.memory_space<vmem>>, vector<8x512xbf16>
    %c40 = arith.constant 40 : index
    %c0_20 = arith.constant 0 : index
    %15 = vector.load %arg8[%c40, %c0_20] : memref<216x512xbf16, #tpu.memory_space<vmem>>, vector<8x512xbf16>
    tpu.vector_store %arg8[%c40, %c0_20], %14 {strides = array<i32>} : memref<216x512xbf16, #tpu.memory_space<vmem>>, vector<8x512xbf16>,
    %c0_21 = arith.constant 0 : index
    %c16_22 = arith.constant 16 : index
    %16 = vector.load %arg7[%c0_21, %c16_22] : memref<8x768xbf16, #tpu.memory_space<vmem>>, vector<8x512xbf16>
    %c48 = arith.constant 48 : index
    %c0_23 = arith.constant 0 : index
    %17 = vector.load %arg8[%c48, %c0_23] : memref<216x512xbf16, #tpu.memory_space<vmem>>, vector<8x512xbf16>
    tpu.vector_store %arg8[%c48, %c0_23], %16 {strides = array<i32>} : memref<216x512xbf16, #tpu.memory_space<vmem>>, vector<8x512xbf16>,
    %c0_24 = arith.constant 0 : index
    %c17 = arith.constant 17 : index
    %18 = vector.load %arg7[%c0_24, %c17] : memref<8x768xbf16, #tpu.memory_space<vmem>>, vector<8x512xbf16>
    %c56 = arith.constant 56 : index
    %c0_25 = arith.constant 0 : index
    %19 = vector.load %arg8[%c56, %c0_25] : memref<216x512xbf16, #tpu.memory_space<vmem>>, vector<8x512xbf16>
    tpu.vector_store %arg8[%c56, %c0_25], %18 {strides = array<i32>} : memref<216x512xbf16, #tpu.memory_space<vmem>>, vector<8x512xbf16>,
    %c0_26 = arith.constant 0 : index
    %c18 = arith.constant 18 : index
    %20 = vector.load %arg7[%c0_26, %c18] : memref<8x768xbf16, #tpu.memory_space<vmem>>, vector<8x512xbf16>
    %c64 = arith.constant 64 : index
    %c0_27 = arith.constant 0 : index
    %21 = vector.load %arg8[%c64, %c0_27] : memref<216x512xbf16, #tpu.memory_space<vmem>>, vector<8x512xbf16>
    tpu.vector_store %arg8[%c64, %c0_27], %20 {strides = array<i32>} : memref<216x512xbf16, #tpu.memory_space<vmem>>, vector<8x512xbf16>,
    %c0_28 = arith.constant 0 : index
    %c64_29 = arith.constant 64 : index
    %22 = vector.load %arg7[%c0_28, %c64_29] : memref<8x768xbf16, #tpu.memory_space<vmem>>, vector<8x512xbf16>
    %c72 = arith.constant 72 : index
    %c0_30 = arith.constant 0 : index
    %23 = vector.load %arg8[%c72, %c0_30] : memref<216x512xbf16, #tpu.memory_space<vmem>>, vector<8x512xbf16>
    tpu.vector_store %arg8[%c72, %c0_30], %22 {strides = array<i32>} : memref<216x512xbf16, #tpu.memory_space<vmem>>, vector<8x512xbf16>,
    %c0_31 = arith.constant 0 : index
    %c65 = arith.constant 65 : index
    %24 = vector.load %arg7[%c0_31, %c65] : memref<8x768xbf16, #tpu.memory_space<vmem>>, vector<8x512xbf16>
    %c80 = arith.constant 80 : index
    %c0_32 = arith.constant 0 : index
    %25 = vector.load %arg8[%c80, %c0_32] : memref<216x512xbf16, #tpu.memory_space<vmem>>, vector<8x512xbf16>
    tpu.vector_store %arg8[%c80, %c0_32], %24 {strides = array<i32>} : memref<216x512xbf16, #tpu.memory_space<vmem>>, vector<8x512xbf16>,
    %c0_33 = arith.constant 0 : index
    %c66 = arith.constant 66 : index
    %26 = vector.load %arg7[%c0_33, %c66] : memref<8x768xbf16, #tpu.memory_space<vmem>>, vector<8x512xbf16>
    %c88 = arith.constant 88 : index
    %c0_34 = arith.constant 0 : index
    %27 = vector.load %arg8[%c88, %c0_34] : memref<216x512xbf16, #tpu.memory_space<vmem>>, vector<8x512xbf16>
    tpu.vector_store %arg8[%c88, %c0_34], %26 {strides = array<i32>} : memref<216x512xbf16, #tpu.memory_space<vmem>>, vector<8x512xbf16>,
    %c0_35 = arith.constant 0 : index
    %c72_36 = arith.constant 72 : index
    %28 = vector.load %arg7[%c0_35, %c72_36] : memref<8x768xbf16, #tpu.memory_space<vmem>>, vector<8x512xbf16>
    %c96 = arith.constant 96 : index
    %c0_37 = arith.constant 0 : index
    %29 = vector.load %arg8[%c96, %c0_37] : memref<216x512xbf16, #tpu.memory_space<vmem>>, vector<8x512xbf16>
    tpu.vector_store %arg8[%c96, %c0_37], %28 {strides = array<i32>} : memref<216x512xbf16, #tpu.memory_space<vmem>>, vector<8x512xbf16>,
    %c0_38 = arith.constant 0 : index
    %c73 = arith.constant 73 : index
    %30 = vector.load %arg7[%c0_38, %c73] : memref<8x768xbf16, #tpu.memory_space<vmem>>, vector<8x512xbf16>
    %c104 = arith.constant 104 : index
    %c0_39 = arith.constant 0 : index
    %31 = vector.load %arg8[%c104, %c0_39] : memref<216x512xbf16, #tpu.memory_space<vmem>>, vector<8x512xbf16>
    tpu.vector_store %arg8[%c104, %c0_39], %30 {strides = array<i32>} : memref<216x512xbf16, #tpu.memory_space<vmem>>, vector<8x512xbf16>,
    %c0_40 = arith.constant 0 : index
    %c74 = arith.constant 74 : index
    %32 = vector.load %arg7[%c0_40, %c74] : memref<8x768xbf16, #tpu.memory_space<vmem>>, vector<8x512xbf16>
    %c112 = arith.constant 112 : index
    %c0_41 = arith.constant 0 : index
    %33 = vector.load %arg8[%c112, %c0_41] : memref<216x512xbf16, #tpu.memory_space<vmem>>, vector<8x512xbf16>
    tpu.vector_store %arg8[%c112, %c0_41], %32 {strides = array<i32>} : memref<216x512xbf16, #tpu.memory_space<vmem>>, vector<8x512xbf16>,
    %c0_42 = arith.constant 0 : index
    %c80_43 = arith.constant 80 : index
    %34 = vector.load %arg7[%c0_42, %c80_43] : memref<8x768xbf16, #tpu.memory_space<vmem>>, vector<8x512xbf16>
    %c120 = arith.constant 120 : index
    %c0_44 = arith.constant 0 : index
    %35 = vector.load %arg8[%c120, %c0_44] : memref<216x512xbf16, #tpu.memory_space<vmem>>, vector<8x512xbf16>
    tpu.vector_store %arg8[%c120, %c0_44], %34 {strides = array<i32>} : memref<216x512xbf16, #tpu.memory_space<vmem>>, vector<8x512xbf16>,
    %c0_45 = arith.constant 0 : index
    %c81 = arith.constant 81 : index
    %36 = vector.load %arg7[%c0_45, %c81] : memref<8x768xbf16, #tpu.memory_space<vmem>>, vector<8x512xbf16>
    %c128 = arith.constant 128 : index
    %c0_46 = arith.constant 0 : index
    %37 = vector.load %arg8[%c128, %c0_46] : memref<216x512xbf16, #tpu.memory_space<vmem>>, vector<8x512xbf16>
    tpu.vector_store %arg8[%c128, %c0_46], %36 {strides = array<i32>} : memref<216x512xbf16, #tpu.memory_space<vmem>>, vector<8x512xbf16>,
    %c0_47 = arith.constant 0 : index
    %c82 = arith.constant 82 : index
    %38 = vector.load %arg7[%c0_47, %c82] : memref<8x768xbf16, #tpu.memory_space<vmem>>, vector<8x512xbf16>
    %c136 = arith.constant 136 : index
    %c0_48 = arith.constant 0 : index
    %39 = vector.load %arg8[%c136, %c0_48] : memref<216x512xbf16, #tpu.memory_space<vmem>>, vector<8x512xbf16>
    tpu.vector_store %arg8[%c136, %c0_48], %38 {strides = array<i32>} : memref<216x512xbf16, #tpu.memory_space<vmem>>, vector<8x512xbf16>,
    %c0_49 = arith.constant 0 : index
    %c128_50 = arith.constant 128 : index
    %40 = vector.load %arg7[%c0_49, %c128_50] : memref<8x768xbf16, #tpu.memory_space<vmem>>, vector<8x512xbf16>
    %c144 = arith.constant 144 : index
    %c0_51 = arith.constant 0 : index
    %41 = vector.load %arg8[%c144, %c0_51] : memref<216x512xbf16, #tpu.memory_space<vmem>>, vector<8x512xbf16>
    tpu.vector_store %arg8[%c144, %c0_51], %40 {strides = array<i32>} : memref<216x512xbf16, #tpu.memory_space<vmem>>, vector<8x512xbf16>,
    %c0_52 = arith.constant 0 : index
    %c129 = arith.constant 129 : index
    %42 = vector.load %arg7[%c0_52, %c129] : memref<8x768xbf16, #tpu.memory_space<vmem>>, vector<8x512xbf16>
    %c152 = arith.constant 152 : index
    %c0_53 = arith.constant 0 : index
    %43 = vector.load %arg8[%c152, %c0_53] : memref<216x512xbf16, #tpu.memory_space<vmem>>, vector<8x512xbf16>
    tpu.vector_store %arg8[%c152, %c0_53], %42 {strides = array<i32>} : memref<216x512xbf16, #tpu.memory_space<vmem>>, vector<8x512xbf16>,
    %c0_54 = arith.constant 0 : index
    %c130 = arith.constant 130 : index
    %44 = vector.load %arg7[%c0_54, %c130] : memref<8x768xbf16, #tpu.memory_space<vmem>>, vector<8x512xbf16>
    %c160 = arith.constant 160 : index
    %c0_55 = arith.constant 0 : index
    %45 = vector.load %arg8[%c160, %c0_55] : memref<216x512xbf16, #tpu.memory_space<vmem>>, vector<8x512xbf16>
    tpu.vector_store %arg8[%c160, %c0_55], %44 {strides = array<i32>} : memref<216x512xbf16, #tpu.memory_space<vmem>>, vector<8x512xbf16>,
    %c0_56 = arith.constant 0 : index
    %c136_57 = arith.constant 136 : index
    %46 = vector.load %arg7[%c0_56, %c136_57] : memref<8x768xbf16, #tpu.memory_space<vmem>>, vector<8x512xbf16>
    %c168 = arith.constant 168 : index
    %c0_58 = arith.constant 0 : index
    %47 = vector.load %arg8[%c168, %c0_58] : memref<216x512xbf16, #tpu.memory_space<vmem>>, vector<8x512xbf16>
    tpu.vector_store %arg8[%c168, %c0_58], %46 {strides = array<i32>} : memref<216x512xbf16, #tpu.memory_space<vmem>>, vector<8x512xbf16>,
    %c0_59 = arith.constant 0 : index
    %c137 = arith.constant 137 : index
    %48 = vector.load %arg7[%c0_59, %c137] : memref<8x768xbf16, #tpu.memory_space<vmem>>, vector<8x512xbf16>
    %c176 = arith.constant 176 : index
    %c0_60 = arith.constant 0 : index
    %49 = vector.load %arg8[%c176, %c0_60] : memref<216x512xbf16, #tpu.memory_space<vmem>>, vector<8x512xbf16>
    tpu.vector_store %arg8[%c176, %c0_60], %48 {strides = array<i32>} : memref<216x512xbf16, #tpu.memory_space<vmem>>, vector<8x512xbf16>,
    %c0_61 = arith.constant 0 : index
    %c138 = arith.constant 138 : index
    %50 = vector.load %arg7[%c0_61, %c138] : memref<8x768xbf16, #tpu.memory_space<vmem>>, vector<8x512xbf16>
    %c184 = arith.constant 184 : index
    %c0_62 = arith.constant 0 : index
    %51 = vector.load %arg8[%c184, %c0_62] : memref<216x512xbf16, #tpu.memory_space<vmem>>, vector<8x512xbf16>
    tpu.vector_store %arg8[%c184, %c0_62], %50 {strides = array<i32>} : memref<216x512xbf16, #tpu.memory_space<vmem>>, vector<8x512xbf16>,
    %c0_63 = arith.constant 0 : index
    %c144_64 = arith.constant 144 : index
    %52 = vector.load %arg7[%c0_63, %c144_64] : memref<8x768xbf16, #tpu.memory_space<vmem>>, vector<8x512xbf16>
    %c192 = arith.constant 192 : index
    %c0_65 = arith.constant 0 : index
    %53 = vector.load %arg8[%c192, %c0_65] : memref<216x512xbf16, #tpu.memory_space<vmem>>, vector<8x512xbf16>
    tpu.vector_store %arg8[%c192, %c0_65], %52 {strides = array<i32>} : memref<216x512xbf16, #tpu.memory_space<vmem>>, vector<8x512xbf16>,
    %c0_66 = arith.constant 0 : index
    %c145 = arith.constant 145 : index
    %54 = vector.load %arg7[%c0_66, %c145] : memref<8x768xbf16, #tpu.memory_space<vmem>>, vector<8x512xbf16>
    %c200 = arith.constant 200 : index
    %c0_67 = arith.constant 0 : index
    %55 = vector.load %arg8[%c200, %c0_67] : memref<216x512xbf16, #tpu.memory_space<vmem>>, vector<8x512xbf16>
    tpu.vector_store %arg8[%c200, %c0_67], %54 {strides = array<i32>} : memref<216x512xbf16, #tpu.memory_space<vmem>>, vector<8x512xbf16>,
    %c0_68 = arith.constant 0 : index
    %c146 = arith.constant 146 : index
    %56 = vector.load %arg7[%c0_68, %c146] : memref<8x768xbf16, #tpu.memory_space<vmem>>, vector<8x512xbf16>
    %c208 = arith.constant 208 : index
    %c0_69 = arith.constant 0 : index
    %57 = vector.load %arg8[%c208, %c0_69] : memref<216x512xbf16, #tpu.memory_space<vmem>>, vector<8x512xbf16>
    tpu.vector_store %arg8[%c208, %c0_69], %56 {strides = array<i32>} : memref<216x512xbf16, #tpu.memory_space<vmem>>, vector<8x512xbf16>,
    %c0_70 = arith.constant 0 : index
    %c0_71 = arith.constant 0 : index
    %58 = vector.load %arg1[%c0_70, %c0_71] : memref<8x216xbf16, #tpu.memory_space<vmem>>, vector<8x216xbf16>
    %c0_72 = arith.constant 0 : index
    %c0_73 = arith.constant 0 : index
    %59 = vector.load %arg8[%c0_72, %c0_73] : memref<216x512xbf16, #tpu.memory_space<vmem>>, vector<216x512xbf16>
    %cst = arith.constant dense<0.000000e+00> : vector<8x512xf32>
    %60 = tpu.matmul %58, %59, %cst {dimension_numbers = #tpu.dot_dimension_numbers<[1], [0], [0], [1], [0, 0, 1, 1], [], []>} : vector<8x216xbf16>, vector<216x512xbf16>, vector<8x512xf32> -> vector<8x512xf32>
    %c0_74 = arith.constant 0 : index
    %c0_75 = arith.constant 0 : index
    %61 = vector.load %arg2[%c0_74, %c0_75] : memref<1x512xf32, #tpu.memory_space<vmem>>, vector<1x512xf32>
    %62 = vector.broadcast %61 : vector<1x512xf32> to vector<8x512xf32>
    %63 = arith.mulf %60, %62 : vector<8x512xf32>
    %cst_76 = arith.constant dense<0.000000e+00> : vector<8xf32>
    %64 = vector.multi_reduction <add>, %63, %cst_76 [1] : vector<8x512xf32> to vector<8xf32>
    %65 = vector.shape_cast %64 : vector<8xf32> to vector<8x1xf32>
    %c0_77 = arith.constant 0 : index
    %c0_78 = arith.constant 0 : index
    %c0_79 = arith.constant 0 : index
    %66 = vector.load %arg5[%c0_77, %c0_78, %c0_79] : memref<1x8x1xf32, #tpu.memory_space<vmem>>, vector<1x8x1xf32>
    %67 = vector.shape_cast %66 : vector<1x8x1xf32> to vector<8x1xf32>
    %68 = vector.shape_cast %65 : vector<8x1xf32> to vector<1x8x1xf32>
    tpu.vector_store %arg5[%c0_77, %c0_78, %c0_79], %68 {strides = array<i32>} : memref<1x8x1xf32, #tpu.memory_space<vmem>>, vector<1x8x1xf32>,
    %69 = arith.mulf %63, %60 : vector<8x512xf32>
    %cst_80 = arith.constant dense<0.000000e+00> : vector<8xf32>
    %70 = vector.multi_reduction <add>, %69, %cst_80 [1] : vector<8x512xf32> to vector<8xf32>
    %71 = vector.shape_cast %70 : vector<8xf32> to vector<8x1xf32>
    %c0_81 = arith.constant 0 : index
    %c0_82 = arith.constant 0 : index
    %c0_83 = arith.constant 0 : index
    %72 = vector.load %arg6[%c0_81, %c0_82, %c0_83] : memref<1x8x1xf32, #tpu.memory_space<vmem>>, vector<1x8x1xf32>
    %73 = vector.shape_cast %72 : vector<1x8x1xf32> to vector<8x1xf32>
    %74 = vector.shape_cast %71 : vector<8x1xf32> to vector<1x8x1xf32>
    tpu.vector_store %arg6[%c0_81, %c0_82, %c0_83], %74 {strides = array<i32>} : memref<1x8x1xf32, #tpu.memory_space<vmem>>, vector<1x8x1xf32>,
    return
  }
  func.func @transform_0(%arg0: i32) -> (i32, i32) {
    %c0_i32 = arith.constant 0 : i32
    %c0_i32_0 = arith.constant 0 : i32
    %c0_i32_1 = arith.constant 0 : i32
    return %c0_i32, %c0_i32_0 : i32, i32
  }
  func.func @transform_1(%arg0: i32) -> (i32, i32) {
    %c0_i32 = arith.constant 0 : i32
    %c0_i32_0 = arith.constant 0 : i32
    return %c0_i32, %arg0 : i32, i32
  }
  func.func @transform_2(%arg0: i32) -> (i32, i32) {
    %c0_i32 = arith.constant 0 : i32
    %c0_i32_0 = arith.constant 0 : i32
    return %c0_i32, %arg0 : i32, i32
  }
  func.func @transform_3(%arg0: i32) -> (i32, i32) {
    %c1_i32 = arith.constant 1 : i32
    %0 = arith.addi %arg0, %c1_i32 : i32
    %c2_i32 = arith.constant 2 : i32
    %1 = arith.muli %0, %c2_i32 : i32
    %c0_i32 = arith.constant 0 : i32
    %c0_i32_0 = arith.constant 0 : i32
    return %c0_i32, %1 : i32, i32
  }
  func.func @transform_4(%arg0: i32) -> (i32, i32, i32) {
    %c0_i32 = arith.constant 0 : i32
    %c0_i32_0 = arith.constant 0 : i32
    %c0_i32_1 = arith.constant 0 : i32
    return %arg0, %c0_i32, %c0_i32_0 : i32, i32, i32
  }
  func.func @transform_5(%arg0: i32) -> (i32, i32, i32) {
    %c0_i32 = arith.constant 0 : i32
    %c0_i32_0 = arith.constant 0 : i32
    %c0_i32_1 = arith.constant 0 : i32
    return %arg0, %c0_i32, %c0_i32_0 : i32, i32, i32
  }
}

</mosaic_0001>

<bundles_post_ra>
// kernel: tpu_custom_call.1
= control target key start
LH: loop header
LB: loop body
LE: loop exit
PB: predicated region body
PF: predicated region fallthrough
CT: control target
= control target key end

     0   :  { %s2483_s0 = inlined_call_operand.hbm [shape: bf16[8,216], index: 0, kind: input, shape index: {}]   ;;  %s2484_s1 = inlined_call_operand.hbm [shape: f32[1,1024], index: 1, kind: input, shape index: {}]   ;;  %s2485_s2 = inlined_call_operand.hbm [shape: bf16[8,1280], index: 2, kind: input, shape index: {}]   ;;  %s2486_s3 = inlined_call_operand.hbm [shape: bf16[8,1280], index: 3, kind: input, shape index: {}]   ;;  %s2487_s4 = inlined_call_operand.vmem [shape: f32[2,8,1], index: 4, kind: output, shape index: {0}]   ;;  %s2488_s5 = inlined_call_operand.vmem [shape: f32[2,8,1], index: 5, kind: output, shape index: {1}]  }
   0x1   :  { %2496 = sst [smem:[#allocation14_spill]] %s2483_s0 }
   0x2   :  { %2497 = sst [smem:[#allocation15_spill]] %s2484_s1 }
   0x3   :  { %11 = vsyncpa [#allocation5], 0 }
   0x4   :  { %12 = vsyncpa [#allocation7], 0 }
   0x5   :  { %14 = vsyncpa [#allocation7 + $0x1], 0 }
   0x6   :  { %15 = vsyncpa [#allocation10], 0 }
   0x7   :  { %17 = vsyncpa [#allocation10 + $0x1], 0  ;;  %s2012_s18 = smov 0   ;;  %s2014_s19 = smov 0  }
   0x8   :  { %s2016_s20 = smov 0   ;;  %s2018_s21 = smov 0  }
   0x9   :  { %s2020_s22 = smov 0   ;;  %s2022_s23 = smov 0  }
   0xa   :  { %s2024_s24 = smov 0  }
   0xb LB: > { %s2044_s25 = sadd.s32 4294967295, %s1959_s24   ;;  %s2047_s26 = sadd.s32 1, %s1959_s24   ;;  %s1959_s24 = sphi %s2024_s24, %s2520_s24   ;;  %s1955_s23 = sphi %s2022_s23, %s2519_s23   ;;  %s1951_s22 = sphi %s2020_s22, %s2518_s22   ;;  %s1947_s21 = sphi %s2018_s21, %s2517_s21   ;;  %s1943_s20 = sphi %s2016_s20, %s2516_s20   ;;  %s1939_s19 = sphi %s2014_s19, %s2515_s19   ;;  %s1935_s18 = sphi %s2012_s18, %s2514_s18  }
   0xc   : > { %s48_s27 = ssub.s32 %s1959_s24, %s2047_s26  ;;  %s51_s28 = sadd.s32 1, %s1955_s23 }
   0xd   : > { %p49_p0 = scmp.eq.s32.totalorder %s48_s27, 0  ;;  %p58_p1 = scmp.ne.s32.totalorder %s1955_s23, %s1951_s22 }
   0xe   : > { %p59_p2 = scmp.eq.s32.totalorder %s1959_s24, 0  ;;  %p64_p3 = scmp.ne.s32.totalorder %s1951_s22, %s1947_s21 }
   0xf   : > { %s2057_s29 = scalar_select %p49_p0, %s1955_s23, %s51_s28  }
  0x10   : > { %p2061_p4 = por %p59_p2, %p58_p1  ;;  %p2489_p5 = scmp.eq.s32.totalorder %s2044_s25, 0 }
  0x11   : > { %s1681_s6 = sshll.u32 %s1959_s24, 1  ;;  %s107_s7 = sadd.s32 1, %s1943_s20 }
  0x12   : > { %s2498_s30 = scalar_select %p2061_p4, 1, 0 }
  0x13   : > { %p2070_p6 = por %p2489_p5, %p64_p3  ;;  %s1682_s9 = sadd.s32 2, %s1681_s6 }
  0x14   : > { %s1684_s10 = sadd.s32 2, %s1682_s9  ;;  %p114_p7 = scmp.ne.s32.totalorder %s1943_s20, %s1939_s19 }
  0x15   : > { %s2499_s8 = scalar_select %p2070_p6, 1, 0 }
  0x16   : > { %s104_s11 = ssub.s32 %s1682_s9, %s1684_s10  ;;  %p120_p8 = scmp.ne.s32.totalorder %s1939_s19, %s1935_s18 }
  0x17   : > { %p105_p9 = scmp.eq.s32.totalorder %s104_s11, 0  ;;  %p2079_p10 = por %p114_p7, %p59_p2 }
  0x18   : > { %p2085_p11 = por %p120_p8, %p2489_p5  ;;  %p1595_p12 = scmp.ge.s32.totalorder %s1959_s24, 1 }
  0x19   : > { %s2500_s12 = scalar_select %p2079_p10, 1, 0 }
  0x1a   : > { %s2501_s13 = scalar_select %p2085_p11, 1, 0 }
  0x1b   : > { %s2091_s14 = scalar_select %p105_p9, %s1943_s20, %s107_s7  }
  0x1c   : > { %p183_p13 = scmp.lt.s32.totalorder %s1959_s24, 3  ;;  %s1961_s16 = smov [#allocation4]  }
  0x1d   : > { %s196_s17 = sshll.u32 %s1961_s16, 4  ;;  %s2504_s0 = sld [smem:[#allocation14_spill]]  ;;  %s197_s17 = int_to_ptr.vmem [resolvable:$true] %s196_s17 }
  0x1e   : > { %p2094_p0 = pnand %p1595_p12, %p183_p13 }
  0x20   : > { %s2502_s15 = scalar_select %p2094_p0, 1, 0 }
  0x21   : > { %p1698_p1 = pneg %p2094_p0 }
  0x23   : > { %p2102_p2 = pnand %p1698_p1, %p2489_p5  ;;  %s1780_s28 = scalar_lea.hbm %s2504_s0, 128 }
  0x24   : > { %p1781_p3 = scmp.ne.s32.totalorder %s2504_s0, %s1780_s28  ;;  %p1787_p12 = scmp.lt.u32.totalorder %s1780_s28, %s2504_s0 }
  0x25   : > { %p1782_p7 = pneg %p2102_p2 }
  0x27   : > { %p1783_p8 = pnand %p1782_p7, %p1781_p3 }
  0x29   : > { %p1784_p9 = pneg %p1783_p8 }
  0x2b   : > { %p1789_p13 = pnand %p1787_p12, %p1784_p9 }
  0x2d   : > { %1792 = shalt.err (!%p1789_p13)
}
  0x2e   : > { %s1793_s11 = scalar_lea.vmem %s197_s17, 128  ;;  %p1801_p6 = scmp.lt.s32.totalorder %s197_s17, %s197_s17 }
  0x2f   : > { %p1794_p1 = scmp.ne.s32.totalorder %s197_s17, %s1793_s11  ;;  %p1802_p0 = scmp.lt.s32.totalorder %s1793_s11, %s1793_s11 }
  0x31   : > { %p1796_p5 = pnand %p1794_p1, %p1782_p7  ;;  %p1803_p10 = por %p1802_p0, %p1801_p6 }
  0x33   : > { %p1797_p11 = pneg %p1796_p5 }
  0x35   : > { %p1804_p4 = pnand %p1803_p10, %p1797_p11 }
  0x37   : > { %1807 = shalt.err (!%p1804_p4)
}
  0x38   : > { %1701 = dma.hbm_to_vmem [thread:$0]  (!%p2102_p2), %s2504_s0, 128, %s197_s17, [#allocation5]  }
  0x39   : > { %p1597_p3 = scmp.ge.s32.totalorder %s1959_s24, 2 }
  0x3a   : > { %s207_s27 = sand.u32 (!%p1597_p3), 1, %s1959_s24   ;;  %s2495_s28 = sand.u32 (!%p1597_p3), 1, %s1955_s23  }
  0x3b   : > { %203 = sbr.rel (%p1597_p3) target bundleno = 148 (0x94), region = 20  ;;  %s1598_s6 = sshll.u32 (!%p1597_p3), %s2495_s28, 2 }
  0x3c   : > { %s1685_s7 = sshll.u32 (!%p1597_p3), %s1959_s24, 6  ;;  %s2505_s1 = sld [smem:[#allocation15_spill]] (!%p1597_p3) }
  0x3d   : > { %s211_s17 = scalar_lea.vmem (!%p1597_p3), [#allocation6], %s1598_s6  ;;  %s2133_s16 = scalar_lea.sflag (!%p1597_p3), [#allocation7], %s207_s27 }
  0x3e   : > { %s219_s11 = sshll.u32 (!%p1597_p3), %s211_s17, 4  ;;  %p2506_p5 = scmp.ne.s32.totalorder (!%p1597_p3), %s2498_s30, 0  ;;  %s220_s11 = int_to_ptr.vmem [resolvable:$true] %s219_s11 }
  0x42   : > { %s2131_s18 = scalar_lea.hbm %s2505_s1, %s1685_s7  ;;  %s1812_s9 = scalar_lea.hbm %s2505_s1, 128 }
  0x43   : > { %s1808_s21 = scalar_lea.hbm %s2131_s18, 64  ;;  %p1813_p11 = scmp.lt.u32.totalorder %s2131_s18, %s2505_s1 }
  0x44   : > { %p1809_p4 = scmp.ne.s32.totalorder %s2131_s18, %s1808_s21  ;;  %p1814_p0 = scmp.lt.u32.totalorder %s1812_s9, %s1808_s21 }
  0x45   : > { %p1816_p7 = scmp.lt.u32.totalorder %s1808_s21, %s2131_s18 }
  0x46   : > { %p1810_p6 = pnand %p1809_p4, %p2506_p5  ;;  %p1815_p2 = por %p1814_p0, %p1813_p11 }
  0x48   : > { %p1811_p10 = pneg %p1810_p6  ;;  %p1817_p8 = por %p1816_p7, %p1815_p2 }
  0x4a   : > { %p1818_p9 = pnand %p1817_p8, %p1811_p10 }
  0x4c   : > { %1821 = shalt.err (!%p1818_p9)
}
  0x4d   : > { %s1822_s27 = scalar_lea.vmem %s220_s11, 64  ;;  %s1962_s6 = smov [#allocation6]  }
  0x4e   : > { %p1823_p12 = scmp.ne.s32.totalorder %s220_s11, %s1822_s27  ;;  %s1826_s17 = sshll.u32 %s1962_s6, 4  ;;  %s1827_s17 = int_to_ptr.vmem [resolvable:$false] %s1826_s17 }
  0x4f   : > { %s1828_s0 = scalar_lea.vmem %s1827_s17, 128  ;;  %p1829_p3 = scmp.lt.s32.totalorder %s220_s11, %s1827_s17 }
  0x50   : > { %p1824_p13 = pnand %p1823_p12, %p2506_p5  ;;  %p1830_p4 = scmp.lt.s32.totalorder %s1828_s0, %s1822_s27 }
  0x52   : > { %p1825_p1 = pneg %p1824_p13  ;;  %p1831_p6 = por %p1830_p4, %p1829_p3 }
  0x54   : > { %p1832_p0 = pnand %p1831_p6, %p1825_p1 }
  0x56   : > { %1835 = shalt.err (!%p1832_p0)
}
  0x57   : > { %1691 = dma.hbm_to_vmem [thread:$0]  (%p2506_p5), %s2131_s18, 64, %s220_s11, %s2133_s16  }
  0x58   : > { %225 = sbr.rel (!%p2506_p5) target bundleno = 122 (0x7a), region = 28  ;;  %s2507_s28 = sand.u32 (%p2506_p5), 1, %s1955_s23  }
  0x59   : > { %s1601_s21 = sshll.u32 (%p2506_p5), %s2507_s28, 4  ;;  %s1602_s9 = sshll.u32 (%p2506_p5), %s1959_s24, 2 }
  0x5a   : > { %s232_s7 = ssub.s32 (%p2506_p5), 10, %s1602_s9  ;;  %s230_s6 = scalar_lea.vmem (%p2506_p5), [#allocation8], %s1601_s21 }
  0x5b   : > { %p233_p10 = scmp.lt.s32.totalorder (%p2506_p5), %s232_s7, 4 }
  0x5f   : > { %s2522_s7 = smov (!%p233_p10, %s232_s7), 4 }
  0x60   : > { %s2158_s10 = sshll.u32 %s2522_s7, 6 }
  0x61   : > { %s237_s27 = ssub.s32 256, %s2158_s10 }
  0x62   : > { %238 = vsyncadd %s2133_s16, %s237_s27  ;;  %p1604_p5 = scmp.ne.s32.totalorder %s2158_s10, 0  ;;  %s1686_s30 = sshll.u32 %s1959_s24, 8 }
  0x63   : > { %s2167_s17 = scalar_lea.hbm %s2485_s2, %s1686_s30  ;;  %s244_s0 = sshll.u32 %s230_s6, 4  ;;  %s245_s0 = int_to_ptr.vmem [resolvable:$true] %s244_s0 }
  0x64   : > { %s1836_s28 = scalar_lea.hbm %s2167_s17, %s2158_s10  ;;  %s1840_s7 = scalar_lea.hbm %s2485_s2, 640 }
  0x65   : > { %p1837_p11 = scmp.ne.s32.totalorder %s2167_s17, %s1836_s28  ;;  %p1841_p8 = scmp.lt.u32.totalorder %s2167_s17, %s2485_s2 }
  0x66   : > { %p1842_p9 = scmp.lt.u32.totalorder %s1840_s7, %s1836_s28  ;;  %p1844_p13 = scmp.lt.u32.totalorder %s1836_s28, %s2167_s17 }
  0x67   : > { %p1838_p2 = pnand %p1837_p11, %p1604_p5 }
  0x68   : > { %p1843_p12 = por %p1842_p9, %p1841_p8 }
  0x69   : > { %p1839_p7 = pneg %p1838_p2 }
  0x6a   : > { %p1845_p1 = por %p1844_p13, %p1843_p12 }
  0x6c   : > { %p1846_p3 = pnand %p1845_p1, %p1839_p7 }
  0x6e   : > { %1849 = shalt.err (!%p1846_p3)
}
  0x6f   : > { %s1850_s6 = scalar_lea.vmem %s245_s0, %s2158_s10  ;;  %s1963_s30 = smov [#allocation8]  }
  0x70   : > { %p1851_p4 = scmp.ne.s32.totalorder %s245_s0, %s1850_s6  ;;  %s1854_s18 = sshll.u32 %s1963_s30, 4  ;;  %s1855_s18 = int_to_ptr.vmem [resolvable:$false] %s1854_s18 }
  0x71   : > { %s1856_s11 = scalar_lea.vmem %s1855_s18, 512  ;;  %p1857_p10 = scmp.lt.s32.totalorder %s245_s0, %s1855_s18 }
  0x72   : > { %p1852_p6 = pnand %p1851_p4, %p1604_p5  ;;  %p1858_p11 = scmp.lt.s32.totalorder %s1856_s11, %s1850_s6 }
  0x74   : > { %p1853_p0 = pneg %p1852_p6  ;;  %p1859_p2 = por %p1858_p11, %p1857_p10 }
  0x76   : > { %p1860_p8 = pnand %p1859_p2, %p1853_p0 }
  0x78   : > { %1863 = shalt.err (!%p1860_p8)
}
  0x79   : > { %247 = dma.hbm_to_vmem [thread:$0]  (%p1604_p5), %s2167_s17, %s2158_s10, %s245_s0, %s2133_s16  }
  0x7a PF: > { %s251_s1 = sand.u32 1, %s1943_s20   ;;  %s1609_s28 = sshll.u32 %s1959_s24, 8 }
  0x7b   : > { %s1608_s21 = sshll.u32 %s251_s1, 3  ;;  %s1496_s27 = scalar_lea.hbm %s2486_s3, %s1609_s28 }
  0x7c   : > { %s2195_s6 = scalar_lea.hbm %s1496_s27, 256  ;;  %s255_s30 = scalar_lea.vmem [#allocation9], %s1608_s21 }
  0x7d   : > { %s265_s18 = sshll.u32 %s255_s30, 4  ;;  %s252_s16 = scalar_lea.sflag [#allocation10], %s251_s1  ;;  %s266_s18 = int_to_ptr.vmem [resolvable:$true] %s265_s18 }
  0x7e   : > { %s1892_s10 = scalar_lea.hbm %s1496_s27, 384  ;;  %p2508_p7 = scmp.ne.s32.totalorder %s2500_s12, 0 }
  0x7f   : > { %p1865_p5 = scmp.ne.s32.totalorder %s2195_s6, %s1892_s10  ;;  %s1868_s0 = scalar_lea.hbm %s2486_s3, 640 }
  0x80   : > { %p1869_p13 = scmp.lt.u32.totalorder %s2195_s6, %s2486_s3  ;;  %p1870_p1 = scmp.lt.u32.totalorder %s1868_s0, %s1892_s10 }
  0x81   : > { %p1866_p9 = pnand %p1865_p5, %p2508_p7  ;;  %p1872_p4 = scmp.lt.u32.totalorder %s1892_s10, %s2195_s6 }
  0x82   : > { %p1871_p3 = por %p1870_p1, %p1869_p13 }
  0x83   : > { %p1867_p12 = pneg %p1866_p9 }
  0x84   : > { %p1873_p6 = por %p1872_p4, %p1871_p3 }
  0x86   : > { %p1874_p0 = pnand %p1873_p6, %p1867_p12 }
  0x88   : > { %1877 = shalt.err (!%p1874_p0)
}
  0x89   : > { %s1878_s1 = scalar_lea.vmem %s266_s18, 128  ;;  %s1964_s21 = smov [#allocation9]  }
  0x8a   : > { %p1879_p10 = scmp.ne.s32.totalorder %s266_s18, %s1878_s1  ;;  %s1882_s9 = sshll.u32 %s1964_s21, 4  ;;  %s1883_s9 = int_to_ptr.vmem [resolvable:$false] %s1882_s9 }
  0x8b   : > { %s1884_s7 = scalar_lea.vmem %s1883_s9, 256  ;;  %p1885_p8 = scmp.lt.s32.totalorder %s266_s18, %s1883_s9 }
  0x8c   : > { %p1880_p11 = pnand %p1879_p10, %p2508_p7  ;;  %p1886_p5 = scmp.lt.s32.totalorder %s1884_s7, %s1878_s1 }
  0x8e   : > { %p1881_p2 = pneg %p1880_p11  ;;  %p1887_p9 = por %p1886_p5, %p1885_p8 }
  0x90   : > { %p1888_p1 = pnand %p1887_p9, %p1881_p2 }
  0x92   : > { %1891 = shalt.err (!%p1888_p1)
}
  0x93   : > { %1692 = dma.hbm_to_vmem [thread:$0]  (%p2508_p7), %s2195_s6, 128, %s266_s18, %s252_s16  }
  0x94 PF: > { %p2509_p12 = scmp.ne.s32.totalorder %s2502_s15, 0 }
  0x95   : > { %p2510_p13 = scmp.eq.s32.totalorder (!%p2509_p12), %s2044_s25, 0 }
  0x96   : > { %274 = sbr.rel (%p2509_p12) target bundleno = 813 (0x32d), region = 36 }
  0x9d   : > { %1922 = dma.done.wait (%p2510_p13), [#allocation5], 128   ;;  %p2511_p3 = pmov %p2510_p13 }
  0x9e   : > { %s280_s27 = sand.u32 1, %s2044_s25   ;;  %s282_s30 = sand.u32 1, %s1951_s22  }
  0x9f   : > { %1924 = vsyncadd (%p2511_p3), [#allocation5], 4294967168  ;;  %s2221_s10 = sshll.u32 %s282_s30, 2  ;;  %s281_s12 = scalar_lea.sflag [#allocation7], %s280_s27 }
  0xa0   : > { %s284_s6 = scalar_lea.vmem [#allocation6], %s2221_s10  ;;  %p2512_p7 = scmp.ne.s32.totalorder %s2499_s8, 0 }
  0xa2   : > { %1926 = dma.done.wait (%p2512_p7), %s281_s12, 320  }
  0xa3   : > { %1928 = vsyncadd (%p2512_p7), %s281_s12, 4294966976  ;;  %s1613_s15 = sshll.u32 %s282_s30, 4  ;;  %s298_s18 = sand.u32 1, %s1939_s19  }
  0xa4   : > { %s1614_s16 = sshll.u32 %s298_s18, 3  ;;  %s293_s24 = scalar_lea.vmem [#allocation8], %s1613_s15 }
  0xa5   : > { %s299_s17 = scalar_lea.sflag [#allocation10], %s298_s18  ;;  %s302_s0 = scalar_lea.vmem [#allocation9], %s1614_s16 }
  0xa6   : > { %p2513_p4 = scmp.ne.s32.totalorder %s2501_s13, 0 }
  0xa8   : > { %1930 = dma.done.wait (%p2513_p4), %s299_s17, 128  }
  0xa9   : > { %1932 = vsyncadd (%p2513_p4), %s299_s17, 4294967168  ;;  %v364_v0 = vld [vmem:[%s302_s0] sm:$0xff]  ;;  %v2235_v2 = vld [vmem:[%s293_s24 + $0x8] sm:$0xff]  ;;  %s1965_s8 = smov 127   ;;  %s1966_s13 = smov 126   ;;  %vm385_vm0 = vcmask 1043456  }
  0xaa   : > { %v2233_v1 = vld [vmem:[%s293_s24] sm:$0xff]  ;;  %365 = vst [vmem:[#allocation2 + $0x10] sm:$0xff] %v364_v0  ;;  %363 = vst [vmem:[#allocation2 + $0x8] sm:$0xff] %v2235_v2  ;;  %s1967_s11 = smov 120   ;;  %s1968_s28 = smov 119   ;;  %vm387_vm1 = vcmask 1039360  }
  0xab   : > { %362 = vst [vmem:[#allocation2] sm:$0xff] %v2233_v1  ;;  %376 = vrot.lane.b32.xlu0 %v2233_v1, %s1965_s8  ;;  %s1969_s1 = smov 118   ;;  %s1970_s21 = smov 112   ;;  %vm411_vm2 = vcmask 1031168   ;;  %vm435_vm3 = vcmask 982016   ;;  %vm459_vm4 = vcmask 973824  }
  0xac   : > { %s1971_s9 = smov 111   ;;  %s1972_s7 = smov 110   ;;  %vm483_vm5 = vcmask 965632   ;;  %vm1298_vm6 = vcmask 719872   ;;  %vm507_vm7 = vcmask 916480   ;;  %vm531_vm8 = vcmask 908288  }
  0xad   : > { %s1973_s27 = smov 64   ;;  %s1974_s30 = smov 63   ;;  %vm555_vm9 = vcmask 900096   ;;  %vm579_vm10 = vcmask 523264   ;;  %vm603_vm11 = vcmask 515072   ;;  %vm627_vm12 = vcmask 506880  }
  0xae   : > { %s1975_s12 = smov 62   ;;  %s1976_s15 = smov 56   ;;  %vm651_vm13 = vcmask 457728   ;;  %vm675_vm14 = vcmask 449536   ;;  %vm699_vm15 = vcmask 441344  }
  0xaf   : > { %378 = vrot.lane.b32.xlu0 %v2235_v2, %s1965_s8  ;;  %s1977_s18 = smov 55   ;;  %s1978_s16 = smov 54  }
  0xb0   : > { %s1979_s24 = smov 48   ;;  %s1980_s17 = smov 47  }
  0xb1   : > { %v372_v3 = vld [vmem:[#allocation2 + $0x10] sm:$0xf]  ;;  %s1981_s0 = smov 46   ;;  %v785_v22 = vld [vmem:[#allocation2 + $0x14] sm:$0xf]  ;;  %p351_p6 = scmp.lt.s32.totalorder %s2044_s25, 1 }
  0xb2   : > { %380 = vrot.lane.b32.xlu1 %v372_v3, %s1965_s8  ;;  %v421_v4 = vld [vmem:[#allocation2 + $0x10] sm:$0xf]  ;;  %v2301_v21 = vld [vmem:[#allocation2 + $0x4] sm:$0xff]  ;;  %v808_v23 = vld [vmem:[#allocation2 + $0x14] sm:$0xf] }
  0xb3   : > { %403 = vrot.lane.b32.xlu0 %v2235_v2, %s1966_s13  ;;  %v397_v5 = vld [vmem:[#allocation2 + $0x10] sm:$0xf]  ;;  %v831_v28 = vld [vmem:[#allocation2 + $0x14] sm:$0xf]  ;;  %s2524_s25 = smov (!%p351_p6, %s2044_s25), 1 }
  0xb4   : > { %v469_v6 = vld [vmem:[#allocation2 + $0x10] sm:$0xf]  ;;  %v854_v37 = vld [vmem:[#allocation2 + $0x14] sm:$0xf]  ;;  %s1615_s10 = sshll.u32 %s2524_s25, 3 }
  0xb5   : > { %v445_v7 = vld [vmem:[#allocation2 + $0x10] sm:$0xf]  ;;  %v877_v52 = vld [vmem:[#allocation2 + $0x14] sm:$0xf] }
  0xb6   : > { %401 = vrot.lane.b32.xlu1 %v2233_v1, %s1966_s13  ;;  %v517_v8 = vld [vmem:[#allocation2 + $0x10] sm:$0xf]  ;;  %v900_v62 = vld [vmem:[#allocation2 + $0x14] sm:$0xf] }
  0xb7   : > { %427 = vrot.lane.b32.xlu0 %v2235_v2, %s1967_s11  ;;  %v493_v9 = vld [vmem:[#allocation2 + $0x10] sm:$0xf] }
  0xb8   : > { %v565_v10 = vld [vmem:[#allocation2 + $0x10] sm:$0xf] }
  0xb9   : > { %v541_v11 = vld [vmem:[#allocation2 + $0x10] sm:$0xf] }
  0xba   : > { %425 = vrot.lane.b32.xlu1 %v2233_v1, %s1967_s11  ;;  %v613_v12 = vld [vmem:[#allocation2 + $0x10] sm:$0xf] }
  0xbb   : > { %429 = vrot.lane.b32.xlu0 %v421_v4, %s1967_s11  ;;  %v589_v13 = vld [vmem:[#allocation2 + $0x10] sm:$0xf] }
  0xbc   : > { %v661_v14 = vld [vmem:[#allocation2 + $0x10] sm:$0xf] }
  0xbd   : > { %v637_v15 = vld [vmem:[#allocation2 + $0x10] sm:$0xf] }
  0xbe   : > { %405 = vrot.lane.b32.xlu1 %v397_v5, %s1966_s13  ;;  %v709_v16 = vld [vmem:[#allocation2 + $0x10] sm:$0xf] }
  0xbf   : > { %451 = vrot.lane.b32.xlu0 %v2235_v2, %s1968_s28  ;;  %v685_v17 = vld [vmem:[#allocation2 + $0x10] sm:$0xf] }
  0xc0   : > { %v757_v18 = vld [vmem:[#allocation2 + $0x10] sm:$0xf] }
  0xc1   : > { %v733_v19 = vld [vmem:[#allocation2 + $0x10] sm:$0xf] }
  0xc2   : > { %449 = vrot.lane.b32.xlu1 %v2233_v1, %s1968_s28  ;;  %v2297_v20 = vld [vmem:[#allocation2 + $0xc] sm:$0xff] }
  0xc3   : > { %475 = vrot.lane.b32.xlu0 %v2235_v2, %s1969_s1 }
  0xc6   : > { %473 = vrot.lane.b32.xlu1 %v2233_v1, %s1969_s1 }
  0xc7   : > { %477 = vrot.lane.b32.xlu0 %v469_v6, %s1969_s1 }
  0xca   : > { %453 = vrot.lane.b32.xlu1 %v445_v7, %s1968_s28 }
  0xcb   : > { %499 = vrot.lane.b32.xlu0 %v2235_v2, %s1970_s21 }
  0xce   : > { %497 = vrot.lane.b32.xlu1 %v2233_v1, %s1970_s21 }
  0xcf   : > { %523 = vrot.lane.b32.xlu0 %v2235_v2, %s1971_s9 }
  0xd2   : > { %521 = vrot.lane.b32.xlu1 %v2233_v1, %s1971_s9 }
  0xd3   : > { %525 = vrot.lane.b32.xlu0 %v517_v8, %s1971_s9 }
  0xd6   : > { %501 = vrot.lane.b32.xlu1 %v493_v9, %s1970_s21 }
  0xd7   : > { %547 = vrot.lane.b32.xlu0 %v2235_v2, %s1972_s7 }
  0xda   : > { %545 = vrot.lane.b32.xlu1 %v2233_v1, %s1972_s7 }
  0xdb   : > { %571 = vrot.lane.b32.xlu0 %v2235_v2, %s1973_s27 }
  0xde   : > { %569 = vrot.lane.b32.xlu1 %v2233_v1, %s1973_s27 }
  0xdf   : > { %573 = vrot.lane.b32.xlu0 %v565_v10, %s1973_s27 }
  0xe2   : > { %549 = vrot.lane.b32.xlu1 %v541_v11, %s1972_s7 }
  0xe3   : > { %595 = vrot.lane.b32.xlu0 %v2235_v2, %s1974_s30 }
  0xe6   : > { %593 = vrot.lane.b32.xlu1 %v2233_v1, %s1974_s30 }
  0xe7   : > { %619 = vrot.lane.b32.xlu0 %v2235_v2, %s1975_s12 }
  0xea   : > { %617 = vrot.lane.b32.xlu1 %v2233_v1, %s1975_s12 }
  0xeb   : > { %621 = vrot.lane.b32.xlu0 %v613_v12, %s1975_s12 }
  0xee   : > { %597 = vrot.lane.b32.xlu1 %v589_v13, %s1974_s30 }
  0xef   : > { %643 = vrot.lane.b32.xlu0 %v2235_v2, %s1976_s15 }
  0xf2   : > { %641 = vrot.lane.b32.xlu1 %v2233_v1, %s1976_s15 }
  0xf3   : > { %667 = vrot.lane.b32.xlu0 %v2235_v2, %s1977_s18 }
  0xf6   : > { %665 = vrot.lane.b32.xlu1 %v2233_v1, %s1977_s18 }
  0xf7   : > { %669 = vrot.lane.b32.xlu0 %v661_v14, %s1977_s18  ;;  %v923_v14 = vld [vmem:[#allocation2 + $0x14] sm:$0xf] }
  0xfa   : > { %645 = vrot.lane.b32.xlu1 %v637_v15, %s1976_s15  ;;  %v946_v15 = vld [vmem:[#allocation2 + $0x14] sm:$0xf] }
  0xfb   : > { %691 = vrot.lane.b32.xlu0 %v2235_v2, %s1978_s16 }
  0xfe   : > { %689 = vrot.lane.b32.xlu1 %v2233_v1, %s1978_s16 }
  0xff   : > { %715 = vrot.lane.b32.xlu0 %v2235_v2, %s1979_s24 }
 0x102   : > { %713 = vrot.lane.b32.xlu1 %v2233_v1, %s1979_s24 }
 0x103   : > { %717 = vrot.lane.b32.xlu0 %v709_v16, %s1979_s24  ;;  %v2355_v16 = vld [vmem:[#allocation4] sm:$0xff] }
 0x106   : > { %693 = vrot.lane.b32.xlu1 %v685_v17, %s1978_s16 }
 0x107   : > { %739 = vrot.lane.b32.xlu0 %v2235_v2, %s1980_s17 }
 0x10a   : > { %737 = vrot.lane.b32.xlu1 %v2233_v1, %s1980_s17 }
 0x10b   : > { %763 = vrot.lane.b32.xlu0 %v2235_v2, %s1981_s0 }
 0x10e   : > { %761 = vrot.lane.b32.xlu1 %v2233_v1, %s1981_s0 }
 0x10f   : > { %765 = vrot.lane.b32.xlu0 %v757_v18, %s1981_s0 }
 0x112   : > { %741 = vrot.lane.b32.xlu1 %v733_v19, %s1980_s17 }
 0x113   : > { %791 = vrot.lane.b32.xlu0 %v2297_v20, %s1965_s8 }
 0x116   : > { %789 = vrot.lane.b32.xlu1 %v2301_v21, %s1965_s8 }
 0x117   : > { %812 = vrot.lane.b32.xlu0 %v2301_v21, %s1966_s13 }
 0x11a   : > { %793 = vrot.lane.b32.xlu1 %v785_v22, %s1965_s8 }
 0x11b   : > { %835 = vrot.lane.b32.xlu0 %v2301_v21, %s1967_s11 }
 0x11d   : > { %v377_v24 = vpop.permute.xlu0 %376 }
 0x11e   : > { %814 = vrot.lane.b32.xlu1 %v2297_v20, %s1966_s13  ;;  %v382_v25 = vrot.slane %v377_v24, 4 }
 0x11f   : > { %816 = vrot.lane.b32.xlu0 %v808_v23, %s1966_s13  ;;  %v1618_v23 = vcombine.high %v2355_v16, %v2355_v16  ;;  %s354_s13 = scalar_lea.vmem %s2487_s4, %s1615_s10 }
 0x121   : > { %v379_v26 = vpop.permute.xlu0 %378  ;;  %1676 = vmatprep.mubr.msk.bf16.mxu0 %vm1298_vm6, %v1618_v23  ;;  %1678 = vmatprep.mubr.msk.bf16.mxu1 %vm1298_vm6, %v1618_v23  ;;  %vm723_vm6 = vcmask 392192  }
 0x122   : > { %v383_v27 = vrot.slane %v379_v26, 4  ;;  %837 = vrot.lane.b32.xlu1 %v2297_v20, %s1967_s11 }
 0x123   : > { %858 = vrot.lane.b32.xlu0 %v2301_v21, %s1968_s28 }
 0x124   : > { %v386_v29 = vsel %vm385_vm0, %v382_v25, %v383_v27  ;;  %v381_v30 = vpop.permute.xlu1 %380 }
 0x125   : > { %v404_v31 = vpop.permute.xlu0 %403  ;;  %v388_v32 = vsel %vm387_vm1, %v377_v24, %v386_v29  ;;  %v384_v33 = vrot.slane %v381_v30, 4 }
 0x126   : > { %v1620_v34 = vcombine.high %v2233_v1, %v388_v32  ;;  %v1619_v35 = vcombine.low %v2233_v1, %v388_v32  ;;  %839 = vrot.lane.b32.xlu1 %v831_v28, %s1967_s11  ;;  %v408_v42 = vrot.slane %v404_v31, 4 }
 0x127   : > { %881 = vrot.lane.b32.xlu0 %v2301_v21, %s1969_s1  ;;  %v389_v36 = vsel %vm385_vm0, %v383_v27, %v384_v33 }
 0x128   : > { %1315 = vmatprep.subr.bf16.mxu0 %v1620_v34  ;;  %v402_v38 = vpop.permute.xlu1 %401  ;;  %v390_v39 = vsel %vm387_vm1, %v379_v26, %v389_v36 }
 0x129   : > { %v428_v40 = vpop.permute.xlu0 %427  ;;  %1316 = vmatpush1.bf16.msra.mxu0 %v1619_v35  ;;  %v407_v41 = vrot.slane %v402_v38, 4  ;;  %v1622_v43 = vcombine.high %v2235_v2, %v390_v39  ;;  %v1621_v44 = vcombine.low %v2235_v2, %v390_v39 }
 0x12a   : > { %860 = vrot.lane.b32.xlu1 %v2297_v20, %s1968_s28  ;;  %v432_v45 = vrot.slane %v428_v40, 4 }
 0x12b   : > { %862 = vrot.lane.b32.xlu0 %v854_v37, %s1968_s28  ;;  %1356 = vmatprep.subr.bf16.mxu1 %v1622_v43  ;;  %v410_v49 = vsel %vm385_vm0, %v407_v41, %v408_v42 }
 0x12c   : > { %v426_v46 = vpop.permute.xlu1 %425  ;;  %1357 = vmatpush1.bf16.msra.mxu1 %v1621_v44  ;;  %v412_v54 = vsel %vm411_vm2, %v402_v38, %v410_v49 }
 0x12d   : > { %v430_v47 = vpop.permute.xlu0 %429  ;;  %v431_v48 = vrot.slane %v426_v46, 4 }
 0x12e   : > { %v433_v50 = vrot.slane %v430_v47, 4  ;;  %883 = vrot.lane.b32.xlu1 %v2297_v20, %s1969_s1 }
 0x12f   : > { %904 = vrot.lane.b32.xlu0 %v2301_v21, %s1970_s21  ;;  %v434_v51 = vsel %vm385_vm0, %v431_v48, %v432_v45 }
 0x130   : > { %v406_v53 = vpop.permute.xlu1 %405  ;;  %v436_v55 = vsel %vm435_vm3, %v426_v46, %v434_v51  ;;  %v437_v58 = vsel %vm385_vm0, %v432_v45, %v433_v50 }
 0x131   : > { %v452_v56 = vpop.permute.xlu0 %451  ;;  %v409_v57 = vrot.slane %v406_v53, 4  ;;  %v1624_v59 = vcombine.high %v412_v54, %v436_v55  ;;  %v1623_v60 = vcombine.low %v412_v54, %v436_v55  ;;  %v438_v1 = vsel %vm435_vm3, %v428_v40, %v437_v58 }
 0x132   : > { %885 = vrot.lane.b32.xlu1 %v877_v52, %s1969_s1  ;;  %v456_v4 = vrot.slane %v452_v56, 4  ;;  %s358_s1 = scalar_lea.vmem %s2488_s5, %s1615_s10 }
 0x133   : > { %927 = vrot.lane.b32.xlu0 %v2301_v21, %s1971_s9  ;;  %v413_v61 = vsel %vm385_vm0, %v408_v42, %v409_v57  ;;  %1317 = vmatprep.subr.bf16.mxu0 %v1624_v59 }
 0x134   : > { %v450_v63 = vpop.permute.xlu1 %449  ;;  %1318 = vmatpush1.bf16.msra.mxu0 %v1623_v60  ;;  %v414_v0 = vsel %vm411_vm2, %v404_v31, %v413_v61 }
 0x135   : > { %v476_v2 = vpop.permute.xlu0 %475  ;;  %v455_v3 = vrot.slane %v450_v63, 4  ;;  %v1626_v5 = vcombine.high %v414_v0, %v438_v1  ;;  %v1625_v6 = vcombine.low %v414_v0, %v438_v1 }
 0x136   : > { %906 = vrot.lane.b32.xlu1 %v2297_v20, %s1970_s21  ;;  %v480_v7 = vrot.slane %v476_v2, 4 }
 0x137   : > { %908 = vrot.lane.b32.xlu0 %v900_v62, %s1970_s21  ;;  %1358 = vmatprep.subr.bf16.mxu1 %v1626_v5  ;;  %v458_v11 = vsel %vm385_vm0, %v455_v3, %v456_v4 }
 0x138   : > { %v474_v8 = vpop.permute.xlu1 %473  ;;  %1359 = vmatpush1.bf16.msra.mxu1 %v1625_v6  ;;  %v460_v18 = vsel %vm459_vm4, %v450_v63, %v458_v11 }
 0x139   : > { %v478_v9 = vpop.permute.xlu0 %477  ;;  %v479_v10 = vrot.slane %v474_v8, 4 }
 0x13a   : > { %v481_v12 = vrot.slane %v478_v9, 4  ;;  %929 = vrot.lane.b32.xlu1 %v2297_v20, %s1971_s9 }
 0x13b   : > { %950 = vrot.lane.b32.xlu0 %v2301_v21, %s1972_s7  ;;  %v482_v13 = vsel %vm385_vm0, %v479_v10, %v480_v7 }
 0x13c   : > { %v454_v17 = vpop.permute.xlu1 %453  ;;  %v484_v19 = vsel %vm483_vm5, %v474_v8, %v482_v13  ;;  %v485_v25 = vsel %vm385_vm0, %v480_v7, %v481_v12 }
 0x13d   : > { %v500_v22 = vpop.permute.xlu0 %499  ;;  %v457_v24 = vrot.slane %v454_v17, 4  ;;  %v1628_v26 = vcombine.high %v460_v18, %v484_v19  ;;  %v1627_v27 = vcombine.low %v460_v18, %v484_v19  ;;  %v486_v31 = vsel %vm483_vm5, %v476_v2, %v485_v25 }
 0x13e   : > { %931 = vrot.lane.b32.xlu1 %v923_v14, %s1971_s9  ;;  %v504_v34 = vrot.slane %v500_v22, 4 }
 0x13f   : > { %954 = vrot.lane.b32.xlu0 %v946_v15, %s1972_s7  ;;  %v461_v28 = vsel %vm385_vm0, %v456_v4, %v457_v24  ;;  %1319 = vmatprep.subr.bf16.mxu0 %v1628_v26 }
 0x140   : > { %v498_v29 = vpop.permute.xlu1 %497  ;;  %1320 = vmatpush1.bf16.msra.mxu0 %v1627_v27  ;;  %v462_v30 = vsel %vm459_vm4, %v452_v56, %v461_v28 }
 0x141   : > { %v524_v32 = vpop.permute.xlu0 %523  ;;  %v503_v33 = vrot.slane %v498_v29, 4  ;;  %v1630_v35 = vcombine.high %v462_v30, %v486_v31  ;;  %v1629_v36 = vcombine.low %v462_v30, %v486_v31 }
 0x142   : > { %952 = vrot.lane.b32.xlu1 %v2297_v20, %s1972_s7  ;;  %v528_v37 = vrot.slane %v524_v32, 4 }
 0x143   : > { %1360 = vmatprep.subr.bf16.mxu1 %v1630_v35  ;;  %v506_v41 = vsel %vm385_vm0, %v503_v33, %v504_v34 }
 0x144   : > { %v522_v38 = vpop.permute.xlu1 %521  ;;  %1361 = vmatpush1.bf16.msra.mxu1 %v1629_v36  ;;  %v508_v45 = vsel %vm507_vm7, %v498_v29, %v506_v41 }
 0x145   : > { %v526_v39 = vpop.permute.xlu0 %525  ;;  %v527_v40 = vrot.slane %v522_v38, 4 }
 0x146   : > { %v529_v42 = vrot.slane %v526_v39, 4 }
 0x147   : > { %v530_v43 = vsel %vm385_vm0, %v527_v40, %v528_v37 }
 0x148   : > { %v502_v44 = vpop.permute.xlu1 %501  ;;  %v532_v46 = vsel %vm531_vm8, %v522_v38, %v530_v43  ;;  %v533_v49 = vsel %vm385_vm0, %v528_v37, %v529_v42 }
 0x149   : > { %v548_v47 = vpop.permute.xlu0 %547  ;;  %v505_v48 = vrot.slane %v502_v44, 4  ;;  %v1632_v50 = vcombine.high %v508_v45, %v532_v46  ;;  %v1631_v51 = vcombine.low %v508_v45, %v532_v46  ;;  %v534_v55 = vsel %vm531_vm8, %v524_v32, %v533_v49 }
 0x14a   : > { %v552_v58 = vrot.slane %v548_v47, 4 }
 0x14b   : > { %v509_v52 = vsel %vm385_vm0, %v504_v34, %v505_v48  ;;  %1321 = vmatprep.subr.bf16.mxu0 %v1632_v50 }
 0x14c   : > { %v546_v53 = vpop.permute.xlu1 %545  ;;  %1322 = vmatpush1.bf16.msra.mxu0 %v1631_v51  ;;  %v510_v54 = vsel %vm507_vm7, %v500_v22, %v509_v52 }
 0x14d   : > { %v572_v56 = vpop.permute.xlu0 %571  ;;  %v551_v57 = vrot.slane %v546_v53, 4  ;;  %v1634_v59 = vcombine.high %v510_v54, %v534_v55  ;;  %v1633_v60 = vcombine.low %v510_v54, %v534_v55 }
 0x14e   : > { %v576_v61 = vrot.slane %v572_v56, 4 }
 0x14f   : > { %1362 = vmatprep.subr.bf16.mxu1 %v1634_v59  ;;  %v554_v1 = vsel %vm385_vm0, %v551_v57, %v552_v58 }
 0x150   : > { %v570_v62 = vpop.permute.xlu1 %569  ;;  %1363 = vmatpush1.bf16.msra.mxu1 %v1633_v60  ;;  %v556_v5 = vsel %vm555_vm9, %v546_v53, %v554_v1 }
 0x151   : > { %v574_v63 = vpop.permute.xlu0 %573  ;;  %v575_v0 = vrot.slane %v570_v62, 4 }
 0x152   : > { %v577_v2 = vrot.slane %v574_v63, 4 }
 0x153   : > { %v578_v3 = vsel %vm385_vm0, %v575_v0, %v576_v61 }
 0x154   : > { %v550_v4 = vpop.permute.xlu1 %549  ;;  %v580_v6 = vsel %vm579_vm10, %v570_v62, %v578_v3  ;;  %v581_v9 = vsel %vm385_vm0, %v576_v61, %v577_v2 }
 0x155   : > { %v596_v7 = vpop.permute.xlu0 %595  ;;  %v553_v8 = vrot.slane %v550_v4, 4  ;;  %v1636_v10 = vcombine.high %v556_v5, %v580_v6  ;;  %v1635_v11 = vcombine.low %v556_v5, %v580_v6  ;;  %v582_v15 = vsel %vm579_vm10, %v572_v56, %v581_v9 }
 0x156   : > { %v600_v19 = vrot.slane %v596_v7, 4  ;;  %vm747_vm10 = vcmask 384000  }
 0x157   : > { %v557_v12 = vsel %vm385_vm0, %v552_v58, %v553_v8  ;;  %1323 = vmatprep.subr.bf16.mxu0 %v1636_v10 }
 0x158   : > { %v594_v13 = vpop.permute.xlu1 %593  ;;  %1324 = vmatpush1.bf16.msra.mxu0 %v1635_v11  ;;  %v558_v14 = vsel %vm555_vm9, %v548_v47, %v557_v12 }
 0x159   : > { %v620_v17 = vpop.permute.xlu0 %619  ;;  %v599_v18 = vrot.slane %v594_v13, 4  ;;  %v1638_v22 = vcombine.high %v558_v14, %v582_v15  ;;  %v1637_v23 = vcombine.low %v558_v14, %v582_v15 }
 0x15a   : > { %v624_v24 = vrot.slane %v620_v17, 4 }
 0x15b   : > { %1364 = vmatprep.subr.bf16.mxu1 %v1638_v22  ;;  %v602_v28 = vsel %vm385_vm0, %v599_v18, %v600_v19 }
 0x15c   : > { %v618_v25 = vpop.permute.xlu1 %617  ;;  %1365 = vmatpush1.bf16.msra.mxu1 %v1637_v23  ;;  %v604_v32 = vsel %vm603_vm11, %v594_v13, %v602_v28 }
 0x15d   : > { %v622_v26 = vpop.permute.xlu0 %621  ;;  %v623_v27 = vrot.slane %v618_v25, 4 }
 0x15e   : > { %v625_v29 = vrot.slane %v622_v26, 4 }
 0x15f   : > { %v626_v30 = vsel %vm385_vm0, %v623_v27, %v624_v24 }
 0x160   : > { %v598_v31 = vpop.permute.xlu1 %597  ;;  %v628_v33 = vsel %vm627_vm12, %v618_v25, %v626_v30  ;;  %v629_v36 = vsel %vm385_vm0, %v624_v24, %v625_v29 }
 0x161   : > { %v644_v34 = vpop.permute.xlu0 %643  ;;  %v601_v35 = vrot.slane %v598_v31, 4  ;;  %v1640_v37 = vcombine.high %v604_v32, %v628_v33  ;;  %v1639_v38 = vcombine.low %v604_v32, %v628_v33  ;;  %v630_v42 = vsel %vm627_vm12, %v620_v17, %v629_v36 }
 0x162   : > { %v648_v45 = vrot.slane %v644_v34, 4 }
 0x163   : > { %v605_v39 = vsel %vm385_vm0, %v600_v19, %v601_v35  ;;  %1325 = vmatprep.subr.bf16.mxu0 %v1640_v37 }
 0x164   : > { %v642_v40 = vpop.permute.xlu1 %641  ;;  %1326 = vmatpush1.bf16.msra.mxu0 %v1639_v38  ;;  %v606_v41 = vsel %vm603_vm11, %v596_v7, %v605_v39  ;;  %vm771_vm11 = vcmask 375808  }
 0x165   : > { %v668_v43 = vpop.permute.xlu0 %667  ;;  %v647_v44 = vrot.slane %v642_v40, 4  ;;  %v1642_v46 = vcombine.high %v606_v41, %v630_v42  ;;  %v1641_v47 = vcombine.low %v606_v41, %v630_v42 }
 0x166   : > { %v672_v48 = vrot.slane %v668_v43, 4 }
 0x167   : > { %1366 = vmatprep.subr.bf16.mxu1 %v1642_v46  ;;  %v650_v52 = vsel %vm385_vm0, %v647_v44, %v648_v45 }
 0x168   : > { %v666_v49 = vpop.permute.xlu1 %665  ;;  %1367 = vmatpush1.bf16.msra.mxu1 %v1641_v47  ;;  %v652_v56 = vsel %vm651_vm13, %v642_v40, %v650_v52 }
 0x169   : > { %v670_v50 = vpop.permute.xlu0 %669  ;;  %v671_v51 = vrot.slane %v666_v49, 4 }
 0x16a   : > { %v673_v53 = vrot.slane %v670_v50, 4 }
 0x16b   : > { %v674_v54 = vsel %vm385_vm0, %v671_v51, %v672_v48 }
 0x16c   : > { %v646_v55 = vpop.permute.xlu1 %645  ;;  %v676_v57 = vsel %vm675_vm14, %v666_v49, %v674_v54  ;;  %v677_v60 = vsel %vm385_vm0, %v672_v48, %v673_v53 }
 0x16d   : > { %v692_v58 = vpop.permute.xlu0 %691  ;;  %v649_v59 = vrot.slane %v646_v55, 4  ;;  %v1644_v61 = vcombine.high %v652_v56, %v676_v57  ;;  %v1643_v62 = vcombine.low %v652_v56, %v676_v57  ;;  %v678_v2 = vsel %vm675_vm14, %v668_v43, %v677_v60 }
 0x16e   : > { %v696_v5 = vrot.slane %v692_v58, 4 }
 0x16f   : > { %v653_v63 = vsel %vm385_vm0, %v648_v45, %v649_v59  ;;  %1327 = vmatprep.subr.bf16.mxu0 %v1644_v61 }
 0x170   : > { %v690_v0 = vpop.permute.xlu1 %689  ;;  %1328 = vmatpush1.bf16.msra.mxu0 %v1643_v62  ;;  %v654_v1 = vsel %vm651_vm13, %v644_v34, %v653_v63 }
 0x171   : > { %v716_v3 = vpop.permute.xlu0 %715  ;;  %v695_v4 = vrot.slane %v690_v0, 4  ;;  %v1646_v6 = vcombine.high %v654_v1, %v678_v2  ;;  %v1645_v7 = vcombine.low %v654_v1, %v678_v2 }
 0x172   : > { %v720_v8 = vrot.slane %v716_v3, 4 }
 0x173   : > { %1368 = vmatprep.subr.bf16.mxu1 %v1646_v6  ;;  %v698_v12 = vsel %vm385_vm0, %v695_v4, %v696_v5 }
 0x174   : > { %v714_v9 = vpop.permute.xlu1 %713  ;;  %1369 = vmatpush1.bf16.msra.mxu1 %v1645_v7  ;;  %v700_v17 = vsel %vm699_vm15, %v690_v0, %v698_v12 }
 0x175   : > { %v718_v10 = vpop.permute.xlu0 %717  ;;  %v719_v11 = vrot.slane %v714_v9, 4 }
 0x176   : > { %v721_v13 = vrot.slane %v718_v10, 4 }
 0x177   : > { %v722_v14 = vsel %vm385_vm0, %v719_v11, %v720_v8 }
 0x178   : > { %v694_v15 = vpop.permute.xlu1 %693  ;;  %v724_v18 = vsel %vm723_vm6, %v714_v9, %v722_v14  ;;  %v725_v23 = vsel %vm385_vm0, %v720_v8, %v721_v13 }
 0x179   : > { %v740_v19 = vpop.permute.xlu0 %739  ;;  %v697_v22 = vrot.slane %v694_v15, 4  ;;  %v1648_v24 = vcombine.high %v700_v17, %v724_v18  ;;  %v1647_v25 = vcombine.low %v700_v17, %v724_v18  ;;  %v726_v29 = vsel %vm723_vm6, %v716_v3, %v725_v23 }
 0x17a   : > { %v744_v32 = vrot.slane %v740_v19, 4 }
 0x17b   : > { %v701_v26 = vsel %vm385_vm0, %v696_v5, %v697_v22  ;;  %1329 = vmatprep.subr.bf16.mxu0 %v1648_v24 }
 0x17c   : > { %v738_v27 = vpop.permute.xlu1 %737  ;;  %1330 = vmatpush1.bf16.msra.mxu0 %v1647_v25  ;;  %v702_v28 = vsel %vm699_vm15, %v692_v58, %v701_v26 }
 0x17d   : > { %v764_v30 = vpop.permute.xlu0 %763  ;;  %v743_v31 = vrot.slane %v738_v27, 4  ;;  %v1650_v33 = vcombine.high %v702_v28, %v726_v29  ;;  %v1649_v34 = vcombine.low %v702_v28, %v726_v29 }
 0x17e   : > { %v768_v35 = vrot.slane %v764_v30, 4 }
 0x17f   : > { %1370 = vmatprep.subr.bf16.mxu1 %v1650_v33  ;;  %v746_v39 = vsel %vm385_vm0, %v743_v31, %v744_v32 }
 0x180   : > { %v762_v36 = vpop.permute.xlu1 %761  ;;  %1371 = vmatpush1.bf16.msra.mxu1 %v1649_v34  ;;  %v748_v43 = vsel %vm747_vm10, %v738_v27, %v746_v39 }
 0x181   : > { %v766_v37 = vpop.permute.xlu0 %765  ;;  %v767_v38 = vrot.slane %v762_v36, 4 }
 0x182   : > { %v769_v40 = vrot.slane %v766_v37, 4 }
 0x183   : > { %v770_v41 = vsel %vm385_vm0, %v767_v38, %v768_v35 }
 0x184   : > { %v742_v42 = vpop.permute.xlu1 %741  ;;  %v772_v44 = vsel %vm771_vm11, %v762_v36, %v770_v41  ;;  %v773_v47 = vsel %vm385_vm0, %v768_v35, %v769_v40 }
 0x185   : > { %v792_v45 = vpop.permute.xlu0 %791  ;;  %v745_v46 = vrot.slane %v742_v42, 4  ;;  %v1652_v48 = vcombine.high %v748_v43, %v772_v44  ;;  %v1651_v49 = vcombine.low %v748_v43, %v772_v44  ;;  %v774_v54 = vsel %vm771_vm11, %v764_v30, %v773_v47 }
 0x186   : > { %v796_v51 = vrot.slane %v792_v45, 4 }
 0x187   : > { %v749_v50 = vsel %vm385_vm0, %v744_v32, %v745_v46  ;;  %1331 = vmatprep.subr.bf16.mxu0 %v1652_v48 }
 0x188   : > { %v790_v52 = vpop.permute.xlu1 %789  ;;  %1332 = vmatpush1.bf16.msra.mxu0 %v1651_v49  ;;  %v750_v53 = vsel %vm747_vm10, %v740_v19, %v749_v50 }
 0x189   : > { %v813_v55 = vpop.permute.xlu0 %812  ;;  %v795_v56 = vrot.slane %v790_v52, 4  ;;  %v1654_v57 = vcombine.high %v750_v53, %v774_v54  ;;  %v1653_v58 = vcombine.low %v750_v53, %v774_v54 }
 0x18a   : > { %v818_v9 = vrot.slane %v813_v55, 4 }
 0x18b   : > { %v798_v59 = vsel %vm385_vm0, %v795_v56, %v796_v51  ;;  %1372 = vmatprep.subr.bf16.mxu1 %v1654_v57 }
 0x18c   : > { %v794_v60 = vpop.permute.xlu1 %793  ;;  %1373 = vmatpush1.bf16.msra.mxu1 %v1653_v58  ;;  %v799_v61 = vsel %vm387_vm1, %v790_v52, %v798_v59 }
 0x18d   : > { %v836_v62 = vpop.permute.xlu0 %835  ;;  %v797_v63 = vrot.slane %v794_v60, 4  ;;  %v1656_v0 = vcombine.high %v2301_v21, %v799_v61  ;;  %v1655_v1 = vcombine.low %v2301_v21, %v799_v61 }
 0x18e   : > { %v841_v10 = vrot.slane %v836_v62, 4 }
 0x18f   : > { %v800_v2 = vsel %vm385_vm0, %v796_v51, %v797_v63  ;;  %1333 = vmatprep.subr.bf16.mxu0 %v1656_v0 }
 0x190   : > { %v801_v3 = vsel %vm387_vm1, %v792_v45, %v800_v2  ;;  %v815_v4 = vpop.permute.xlu1 %814  ;;  %1334 = vmatpush1.bf16.msra.mxu0 %v1655_v1 }
 0x191   : > { %v817_v5 = vpop.permute.xlu0 %816  ;;  %v1657_v6 = vcombine.low %v2297_v20, %v801_v3  ;;  %v1658_v7 = vcombine.high %v2297_v20, %v801_v3  ;;  %v819_v8 = vrot.slane %v815_v4, 4 }
 0x192   : > { %v820_v14 = vrot.slane %v817_v5, 4 }
 0x193   : > { %1374 = vmatprep.subr.bf16.mxu1 %v1658_v7  ;;  %v821_v21 = vsel %vm385_vm0, %v818_v9, %v819_v8 }
 0x194   : > { %v838_v11 = vpop.permute.xlu1 %837  ;;  %1375 = vmatpush1.bf16.msra.mxu1 %v1657_v6  ;;  %v822_v17 = vsel %vm411_vm2, %v813_v55, %v821_v21  ;;  %v823_v25 = vsel %vm385_vm0, %v819_v8, %v820_v14 }
 0x195   : > { %v859_v12 = vpop.permute.xlu0 %858  ;;  %v842_v13 = vrot.slane %v838_v11, 4  ;;  %v824_v28 = vsel %vm411_vm2, %v815_v4, %v823_v25 }
 0x196   : > { %v864_v32 = vrot.slane %v859_v12, 4 }
 0x197   : > { %v844_v15 = vsel %vm385_vm0, %v841_v10, %v842_v13 }
 0x198   : > { %v845_v18 = vsel %vm435_vm3, %v836_v62, %v844_v15  ;;  %v840_v19 = vpop.permute.xlu1 %839 }
 0x199   : > { %v882_v22 = vpop.permute.xlu0 %881  ;;  %v1659_v20 = vcombine.low %v822_v17, %v845_v18  ;;  %v1660_v23 = vcombine.high %v822_v17, %v845_v18  ;;  %v843_v24 = vrot.slane %v840_v19, 4 }
 0x19a   : > { %v887_v35 = vrot.slane %v882_v22, 4 }
 0x19b   : > { %v846_v26 = vsel %vm385_vm0, %v842_v13, %v843_v24  ;;  %1335 = vmatprep.subr.bf16.mxu0 %v1660_v23 }
 0x19c   : > { %v861_v27 = vpop.permute.xlu1 %860  ;;  %1336 = vmatpush1.bf16.msra.mxu0 %v1659_v20  ;;  %v847_v29 = vsel %vm435_vm3, %v838_v11, %v846_v26 }
 0x19d   : > { %v863_v30 = vpop.permute.xlu0 %862  ;;  %v865_v31 = vrot.slane %v861_v27, 4  ;;  %v1662_v33 = vcombine.high %v824_v28, %v847_v29  ;;  %v1661_v34 = vcombine.low %v824_v28, %v847_v29  ;;  %v1617_v29 = vcombine.low %v2355_v16, %v2355_v16 }
 0x19e   : > { %v866_v40 = vrot.slane %v863_v30, 4 }
 0x19f   : > { %1376 = vmatprep.subr.bf16.mxu1 %v1662_v33  ;;  %v867_v38 = vsel %vm385_vm0, %v864_v32, %v865_v31 }
 0x1a0   : > { %v884_v36 = vpop.permute.xlu1 %883  ;;  %1377 = vmatpush1.bf16.msra.mxu1 %v1661_v34  ;;  %v868_v42 = vsel %vm459_vm4, %v859_v12, %v867_v38  ;;  %v869_v49 = vsel %vm385_vm0, %v865_v31, %v866_v40  ;;  %v1399_v31 = vlaneseq  ;;  %v1397_v34 = vld [vmem:[%s284_s6] sm:$0xf] }
 0x1a1   : > { %v905_v37 = vpop.permute.xlu0 %904  ;;  %v888_v39 = vrot.slane %v884_v36, 4  ;;  %v870_v52 = vsel %vm459_vm4, %v861_v27, %v869_v49 }
 0x1a2   : > { %v910_v56 = vrot.slane %v905_v37, 4  ;;  %v1400_v32 = vshrl.u32 %v1399_v31, 7 }
 0x1a3   : > { %v890_v41 = vsel %vm385_vm0, %v887_v35, %v888_v39 }
 0x1a4   : > { %v891_v43 = vsel %vm483_vm5, %v882_v22, %v890_v41  ;;  %v886_v44 = vpop.permute.xlu1 %885  ;;  %v1401_v33 = vsub.s32 0, %v1400_v32  ;;  %v1405_v35 = vsub.s32 1, %v1400_v32 }
 0x1a5   : > { %v928_v45 = vpop.permute.xlu0 %927  ;;  %v1663_v46 = vcombine.low %v868_v42, %v891_v43  ;;  %v1664_v47 = vcombine.high %v868_v42, %v891_v43  ;;  %v889_v48 = vrot.slane %v886_v44, 4 }
 0x1a6   : > { %v933_v59 = vrot.slane %v928_v45, 4  ;;  %v1402_v38 = vrot.slane %v1397_v34, %v1401_v33 }
 0x1a7   : > { %v892_v50 = vsel %vm385_vm0, %v888_v39, %v889_v48  ;;  %1337 = vmatprep.subr.bf16.mxu0 %v1664_v47  ;;  %v1406_v39 = vrot.slane %v1397_v34, %v1405_v35 }
 0x1a8   : > { %v907_v51 = vpop.permute.xlu1 %906  ;;  %1338 = vmatpush1.bf16.msra.mxu0 %v1663_v46  ;;  %v893_v53 = vsel %vm483_vm5, %v884_v36, %v892_v50  ;;  %v1409_v36 = vsub.s32 2, %v1400_v32 }
 0x1a9   : > { %v909_v54 = vpop.permute.xlu0 %908  ;;  %v911_v55 = vrot.slane %v907_v51, 4  ;;  %v1666_v57 = vcombine.high %v870_v52, %v893_v53  ;;  %v1665_v58 = vcombine.low %v870_v52, %v893_v53 }
 0x1aa   : > { %v912_v0 = vrot.slane %v909_v54, 4  ;;  %v1410_v40 = vrot.slane %v1397_v34, %v1409_v36 }
 0x1ab   : > { %1378 = vmatprep.subr.bf16.mxu1 %v1666_v57  ;;  %v913_v62 = vsel %vm385_vm0, %v910_v56, %v911_v55 }
 0x1ac   : > { %v930_v60 = vpop.permute.xlu1 %929  ;;  %1379 = vmatpush1.bf16.msra.mxu1 %v1665_v58  ;;  %v914_v2 = vsel %vm507_vm7, %v905_v37, %v913_v62  ;;  %v915_v9 = vsel %vm385_vm0, %v911_v55, %v912_v0  ;;  %v1413_v37 = vsub.s32 3, %v1400_v32 }
 0x1ad   : > { %v951_v61 = vpop.permute.xlu0 %950  ;;  %v934_v63 = vrot.slane %v930_v60, 4  ;;  %v916_v13 = vsel %vm507_vm7, %v907_v51, %v915_v9 }
 0x1ae   : > { %v956_v11 = vrot.slane %v951_v61, 4  ;;  %v1414_v42 = vrot.slane %v1397_v34, %v1413_v37 }
 0x1af   : > { %v936_v1 = vsel %vm385_vm0, %v933_v59, %v934_v63 }
 0x1b0   : > { %v937_v3 = vsel %vm531_vm8, %v928_v45, %v936_v1  ;;  %v932_v4 = vpop.permute.xlu1 %931 }
 0x1b1   : > { %v955_v5 = vpop.permute.xlu0 %954  ;;  %v1667_v6 = vcombine.low %v914_v2, %v937_v3  ;;  %v1668_v7 = vcombine.high %v914_v2, %v937_v3  ;;  %v935_v8 = vrot.slane %v932_v4, 4 }
 0x1b2   : > { %v958_v12 = vrot.slane %v955_v5, 4 }
 0x1b3   : > { %v938_v10 = vsel %vm385_vm0, %v934_v63, %v935_v8  ;;  %1339 = vmatprep.subr.bf16.mxu0 %v1668_v7 }
 0x1b4   : > { %v953_v21 = vpop.permute.xlu1 %952  ;;  %1340 = vmatpush1.bf16.msra.mxu0 %v1667_v6  ;;  %v939_v14 = vsel %vm531_vm8, %v930_v60, %v938_v10 }
 0x1b5   : > { %v957_v15 = vrot.slane %v953_v21, 4  ;;  %v1670_v17 = vcombine.high %v916_v13, %v939_v14  ;;  %v1669_v18 = vcombine.low %v916_v13, %v939_v14 }
 0x1b7   : > { %v959_v19 = vsel %vm385_vm0, %v956_v11, %v957_v15  ;;  %1380 = vmatprep.subr.bf16.mxu1 %v1670_v17  ;;  %v961_v22 = vsel %vm385_vm0, %v957_v15, %v958_v12 }
 0x1b8   : > { %v960_v20 = vsel %vm555_vm9, %v951_v61, %v959_v19  ;;  %1381 = vmatpush1.bf16.msra.mxu1 %v1669_v18  ;;  %v962_v23 = vsel %vm555_vm9, %v953_v21, %v961_v22 }
 0x1b9   : > { %v1671_v24 = vcombine.low %v960_v20, %v960_v20  ;;  %v1672_v25 = vcombine.high %v960_v20, %v960_v20  ;;  %v1674_v26 = vcombine.high %v962_v23, %v962_v23  ;;  %v1673_v27 = vcombine.low %v962_v23, %v962_v23 }
 0x1bb   : > { %1675 = vmatprep.subr.msk.bf16.mxu0 %vm385_vm0, %v1672_v25  ;;  %v1304_v28 = vsel %vm385_vm0, %v1671_v24, 0  ;;  %1677 = vmatprep.subr.msk.bf16.mxu1 %vm385_vm0, %v1674_v26  ;;  %v1310_v30 = vsel %vm385_vm0, %v1673_v27, 0  ;;  %vm1428_vm0 = vcmask 7168  }
 0x1bc   : > { %1342 = vmatpush1.bf16.msra.mxu0 %v1304_v28  ;;  %1383 = vmatpush1.bf16.msra.mxu1 %v1310_v30 }
 0x1bf   : > { %1348 = vmatmul.mubr.bf16.vlgmr.msra.gmra.mrb[0].mxu0 %v1617_v29  ;;  %1389 = vmatmul.mubr.bf16.vlgmr.msra.gmra.mrb[0].mxu1 %v1617_v29 }
 0x292   : > { %v1349_v16 = vpop.f32.mrb[0].mxu0  ;;  %v1390_v41 = vpop.f32.mrb[0].mxu1 }
 0x293   : > { %v1419_v43 = vmul.f32 %v1402_v38, %v1349_v16  ;;  %v1351_v44 = vpop.f32.mrb[1].mxu0  ;;  %v1392_v45 = vpop.f32.mrb[1].mxu1  ;;  %v1421_v48 = vmul.f32 %v1410_v40, %v1390_v41 }
 0x294   : > { %v1420_v46 = vmul.f32 %v1406_v39, %v1351_v44  ;;  %v1353_v47 = vpop.f32.mrb[2].mxu0  ;;  %v1394_v49 = vpop.f32.mrb[2].mxu1  ;;  %v1422_v55 = vmul.f32 %v1414_v42, %v1392_v45 }
 0x295   : > { %v1430_v50 = vmul.f32 %v1419_v43, %v1349_v16  ;;  %v1354_v51 = vpop.f32.mrb[3].mxu0  ;;  %v1395_v52 = vpop.f32.mrb[3].mxu1  ;;  %v1432_v57 = vmul.f32 %v1421_v48, %v1390_v41 }
 0x296   : > { %v1423_v53 = vadd.f32 %v1420_v46, %v1419_v43  ;;  %v1431_v54 = vmul.f32 %v1420_v46, %v1351_v44  ;;  %v1433_v59 = vmul.f32 %v1422_v55, %v1392_v45 }
 0x298   : > { %v1434_v56 = vadd.f32 %v1431_v54, %v1430_v50  ;;  %v1424_v58 = vadd.f32 %v1423_v53, %v1421_v48 }
 0x29a   : > { %v1425_v60 = vadd.f32 %v1424_v58, %v1422_v55  ;;  %v1435_v61 = vadd.f32 %v1434_v56, %v1432_v57 }
 0x29c   : > { %1426 = vadd.xlane.f32.xlu1 %v1425_v60  ;;  %v1436_v62 = vadd.f32 %v1435_v61, %v1433_v59 }
 0x29e   : > { %1437 = vadd.xlane.f32.xlu0 %v1436_v62 }
 0x329   : > { %v1427_v63 = vpop.xlane.xlu1 %1426 }
 0x32a   : > { %1429 = vst.msk [vmem:[%s354_s13] sm:$0xff] %vm1428_vm0, %v1427_v63 }
 0x32b   : > { %v1438_v0 = vpop.xlane.xlu0 %1437 }
 0x32c   : > { %1439 = vst.msk [vmem:[%s358_s1] sm:$0xff] %vm1428_vm0, %v1438_v0 }
 0x32d PF: > { %p20_p0 = scmp.ge.s32.totalorder %s2047_s26, 4   ;;  %s2514_s18 = smov %s1939_s19 }
 0x32e   : > { %s2515_s19 = smov %s1943_s20  ;;  %s2516_s20 = smov %s2091_s14 }
 0x32f   : > { %s2517_s21 = smov %s1951_s22  ;;  %s2518_s22 = smov %s1955_s23 }
 0x330   : > { %s2519_s23 = smov %s2057_s29  ;;  %s2520_s24 = smov %s2047_s26 }
 0x331   :  { %22 = sbr.rel (!%p20_p0) target bundleno = 11 (0xb), region = 117 }
 0x338   :  { %1473 = vsyncpa [#allocation5], 1 }
 0x339   :  { %1475 = vsyncpa [#allocation5 + $0x1], 1 }
 0x33a   :  { %1476 = vsyncpa [#allocation7], 1 }
 0x33b   :  { %1478 = vsyncpa [#allocation7 + $0x1], 1 }
 0x33c   :  { %1479 = vsyncpa [#allocation10], 1 }
 0x33d   :  { %1481 = vsyncpa [#allocation10 + $0x1], 1 }

</bundles_post_ra>
